<compile_context>
chip_gen: v5e
topology: v5e:2x2
jax: 0.10.0
libtpu: 0.0.40
codegen_flags: <defaults>
</compile_context>

<pallas_src>
import functools

import jax
import jax.numpy as jnp
from jax.experimental import pallas as pl
from jax.experimental.pallas import tpu as pltpu


def _deconv_relu_kernel(x_ref, wc_ref, wp_ref, b_ref, o_ref):
    """One batch element per grid step.

    x_ref  : (Lin, Cin)       input sequence, time on sublanes, channels on lanes
    wc_ref : (Cin, S*Cout)    fused weights for taps k = 0..S-1   (use x[a])
    wp_ref : (Cin, S*Cout)    fused weights for taps k = S..2S-1  (use x[a-1])
    b_ref  : (1,  S*Cout)     bias tiled S times
    o_ref  : (Lin+1, S*Cout)  grouped output; row-major identical to the flat
                              (S*Lin + S, Cout) upsampled sequence
    """
    lin = x_ref.shape[0]
    x = x_ref[...]
    bias = b_ref[...]

    # Two MXU matmuls cover all K = 2*S taps of the transposed conv.
    p = jnp.dot(x, wc_ref[...], preferred_element_type=jnp.float32)  # x[a]   @ Wcur
    q = jnp.dot(x, wp_ref[...], preferred_element_type=jnp.float32)  # x[a]   @ Wprev

    # out[a] = relu(x[a] @ Wcur + x[a-1] @ Wprev + b),  a in [0, Lin]
    # x[-1] and x[Lin] are implicit zeros -> boundary rows handled separately.
    o_ref[0:1, :] = jnp.maximum(p[0:1, :] + bias, 0.0).astype(o_ref.dtype)
    o_ref[1:lin, :] = jnp.maximum(
        p[1:lin, :] + q[0:lin - 1, :] + bias, 0.0).astype(o_ref.dtype)
    o_ref[lin:lin + 1, :] = jnp.maximum(
        q[lin - 1:lin, :] + bias, 0.0).astype(o_ref.dtype)


def _conv_transpose1d_relu(h, w, b, *, stride):
    """ConvTranspose1d(stride, K=2*stride, no padding) + ReLU.

    h : (B, Lin, Cin)   time-major activations.
    w : (Cin, Cout, K)  PyTorch ConvTranspose1d weight layout.
    b : (Cout,)
    returns (B, stride*Lin + stride, Cout) time-major.
    """
    batch, lin, cin = h.shape
    w_cin, cout, ksize = w.shape
    assert w_cin == cin
    # TODO(synk): a general K would need ceil(K/stride) shifted matmul terms;
    # the module fixes K = 2*stride (8, 4) so exactly two terms are required.
    assert ksize == 2 * stride
    assert lin >= 2

    sc = stride * cout
    w_cur = jnp.transpose(w[:, :, :stride], (0, 2, 1)).reshape(cin, sc)
    w_prev = jnp.transpose(w[:, :, stride:], (0, 2, 1)).reshape(cin, sc)
    bias = jnp.tile(b, stride).reshape(1, sc)

    out_grouped = pl.pallas_call(
        _deconv_relu_kernel,
        out_shape=jax.ShapeDtypeStruct((batch, lin + 1, sc), h.dtype),
        grid_spec=pltpu.PrefetchScalarGridSpec(
            num_scalar_prefetch=0,
            grid=(batch,),
            in_specs=[
                pl.BlockSpec((None, lin, cin), lambda i: (i, 0, 0)),
                pl.BlockSpec((cin, sc), lambda i: (0, 0)),
                pl.BlockSpec((cin, sc), lambda i: (0, 0)),
                pl.BlockSpec((1, sc), lambda i: (0, 0)),
            ],
            out_specs=pl.BlockSpec((None, lin + 1, sc), lambda i: (i, 0, 0)),
        ),
        compiler_params=pltpu.CompilerParams(
            dimension_semantics=("parallel",)),
    )(h, w_cur, w_prev, bias)

    # Row-major (B, Lin+1, S*Cout) == (B, S*(Lin+1), Cout): free reshape.
    return out_grouped.reshape(batch, stride * (lin + 1), cout)


def sentence_embedding_heads(bert_out, conv_params, *, stride):
    """bert_out: (B, T+2, H) BERT last_hidden_state -> (gc_embed, lc_embed)."""
    gc_embed = bert_out[:, 0, :]                       # [CLS] global condition
    h = bert_out[:, 1:-1, :]                           # (B, T, H), time-major
    for w, b in conv_params:
        h = _conv_transpose1d_relu(h, w, b, stride=stride)
    lc_embed = jnp.transpose(h, (0, 2, 1))             # (B, Cout, L) like PyTorch
    return gc_embed, lc_embed


def _reference(bert_out, conv_params, *, stride):
    """Plain-JAX reference matching the PyTorch forward (post-BERT part)."""
    gc = bert_out[:, 0, :]
    x = jnp.transpose(bert_out[:, 1:-1, :], (0, 2, 1))     # (B, C, T)
    for w, b in conv_params:
        ksize = w.shape[2]
        w_oih = jnp.transpose(w[:, :, ::-1], (1, 0, 2))    # flip taps, (Cout,Cin,K)
        x = jax.lax.conv_general_dilated(
            x, w_oih, window_strides=(1,),
            padding=[(ksize - 1, ksize - 1)],
            lhs_dilation=(stride,),
            dimension_numbers=("NCH", "OIH", "NCH"))
        x = jnp.maximum(x + b[None, :, None], 0.0)
    return gc, x


if __name__ == "__main__":
    batch, seq, hidden = 2, 8, 32            # tokens are (B, T+2); hidden = BERT dim
    in_channels, out_channels = hidden, 32   # stride*out_channels = 128 -> lane-dense
    kernel_size, stride, n_layers = 8, 4, 4

    key = jax.random.PRNGKey(0)
    keys = jax.random.split(key, 1 + 2 * n_layers)

    # TODO(synk): stand-in for the BERT last_hidden_state (the pretrained encoder
    #             cannot be reproduced in a self-contained script).
    bert_out = jax.random.normal(keys[0], (batch, seq + 2, hidden), jnp.float32)

    conv_params = []
    cin = in_channels
    for layer in range(n_layers):
        kw, kb = keys[1 + 2 * layer], keys[2 + 2 * layer]
        scale = float(1.0 / (cin * kernel_size) ** 0.5)
        w = jax.random.uniform(kw, (cin, out_channels, kernel_size),
                               jnp.float32, -1.0, 1.0) * scale
        b = jax.random.uniform(kb, (out_channels,), jnp.float32, -1.0, 1.0) * scale
        conv_params.append((w, b))
        cin = out_channels

    fwd = jax.jit(functools.partial(sentence_embedding_heads, stride=stride))
    gc_embed, lc_embed = fwd(bert_out, conv_params)
    jax.block_until_ready((gc_embed, lc_embed))

    gc_ref, lc_ref = _reference(bert_out, conv_params, stride=stride)
    assert gc_embed.shape == (batch, hidden)
    assert lc_embed.shape == lc_ref.shape == (batch, out_channels, 2388)
    assert jnp.allclose(gc_embed, gc_ref)
    assert jnp.allclose(lc_embed, lc_ref, atol=1e-4, rtol=1e-4)

    print("KERNEL_OK")
</pallas_src>

<mosaic_0001>
module attributes {stable_mosaic.version = 11 : i64} {
  func.func @_deconv_relu_kernel(%arg0: i32, %arg1: memref<1x36x32xf32, #tpu.memory_space<vmem>>, %arg2: memref<32x128xf32, #tpu.memory_space<vmem>>, %arg3: memref<32x128xf32, #tpu.memory_space<vmem>>, %arg4: memref<1x128xf32, #tpu.memory_space<vmem>>, %arg5: memref<1x37x128xf32, #tpu.memory_space<vmem>>) attributes {dimension_semantics = [#tpu.dimension_semantics<parallel>], iteration_bounds = array<i64: 2>, scalar_prefetch = 0 : i64, scratch_operands = 0 : i64, tpu.core_type = #tpu.core_type<tc>, window_params = [{transform_indices = @transform_0, window_bounds = array<i64: 1, 36, 32>}, {pipeline_mode = #tpu.pipeline_mode<synchronous>, transform_indices = @transform_1, window_bounds = array<i64: 32, 128>}, {pipeline_mode = #tpu.pipeline_mode<synchronous>, transform_indices = @transform_2, window_bounds = array<i64: 32, 128>}, {pipeline_mode = #tpu.pipeline_mode<synchronous>, transform_indices = @transform_3, window_bounds = array<i64: 1, 128>}, {transform_indices = @transform_4, window_bounds = array<i64: 1, 37, 128>}]} {
    %c0 = arith.constant 0 : index
    %c0_0 = arith.constant 0 : index
    %c0_1 = arith.constant 0 : index
    %0 = vector.load %arg1[%c0, %c0_0, %c0_1] : memref<1x36x32xf32, #tpu.memory_space<vmem>>, vector<1x36x32xf32>
    %1 = vector.shape_cast %0 : vector<1x36x32xf32> to vector<36x32xf32>
    %c0_2 = arith.constant 0 : index
    %c0_3 = arith.constant 0 : index
    %2 = vector.load %arg4[%c0_2, %c0_3] : memref<1x128xf32, #tpu.memory_space<vmem>>, vector<1x128xf32>
    %c0_4 = arith.constant 0 : index
    %c0_5 = arith.constant 0 : index
    %3 = vector.load %arg2[%c0_4, %c0_5] : memref<32x128xf32, #tpu.memory_space<vmem>>, vector<32x128xf32>
    %cst = arith.constant dense<0.000000e+00> : vector<36x128xf32>
    %4 = tpu.matmul %1, %3, %cst {dimension_numbers = #tpu.dot_dimension_numbers<[1], [0], [0], [1], [0, 0, 1, 1], [], []>} : vector<36x32xf32>, vector<32x128xf32>, vector<36x128xf32> -> vector<36x128xf32>
    %c0_6 = arith.constant 0 : index
    %c0_7 = arith.constant 0 : index
    %5 = vector.load %arg3[%c0_6, %c0_7] : memref<32x128xf32, #tpu.memory_space<vmem>>, vector<32x128xf32>
    %cst_8 = arith.constant dense<0.000000e+00> : vector<36x128xf32>
    %6 = tpu.matmul %1, %5, %cst_8 {dimension_numbers = #tpu.dot_dimension_numbers<[1], [0], [0], [1], [0, 0, 1, 1], [], []>} : vector<36x32xf32>, vector<32x128xf32>, vector<36x128xf32> -> vector<36x128xf32>
    %7 = vector.extract_strided_slice %4 {offsets = [0, 0], sizes = [1, 128], strides = [1, 1]} : vector<36x128xf32> to vector<1x128xf32>
    %8 = arith.addf %7, %2 : vector<1x128xf32>
    %cst_9 = arith.constant 0.000000e+00 : f32
    %9 = vector.broadcast %cst_9 : f32 to vector<1x128xf32>
    %10 = arith.maximumf %8, %9 : vector<1x128xf32>
    %c0_10 = arith.constant 0 : index
    %c0_11 = arith.constant 0 : index
    %c0_12 = arith.constant 0 : index
    %11 = vector.load %arg5[%c0_10, %c0_11, %c0_12] : memref<1x37x128xf32, #tpu.memory_space<vmem>>, vector<1x1x128xf32>
    %12 = vector.shape_cast %11 : vector<1x1x128xf32> to vector<1x128xf32>
    %13 = vector.shape_cast %10 : vector<1x128xf32> to vector<1x1x128xf32>
    tpu.vector_store %arg5[%c0_10, %c0_11, %c0_12], %13 {strides = array<i32>} : memref<1x37x128xf32, #tpu.memory_space<vmem>>, vector<1x1x128xf32>,
    %14 = vector.extract_strided_slice %4 {offsets = [1, 0], sizes = [35, 128], strides = [1, 1]} : vector<36x128xf32> to vector<35x128xf32>
    %15 = vector.extract_strided_slice %6 {offsets = [0, 0], sizes = [35, 128], strides = [1, 1]} : vector<36x128xf32> to vector<35x128xf32>
    %16 = arith.addf %14, %15 : vector<35x128xf32>
    %17 = vector.broadcast %2 : vector<1x128xf32> to vector<35x128xf32>
    %18 = arith.addf %16, %17 : vector<35x128xf32>
    %cst_13 = arith.constant 0.000000e+00 : f32
    %19 = vector.broadcast %cst_13 : f32 to vector<35x128xf32>
    %20 = arith.maximumf %18, %19 : vector<35x128xf32>
    %c0_14 = arith.constant 0 : index
    %c1 = arith.constant 1 : index
    %c0_15 = arith.constant 0 : index
    %21 = vector.load %arg5[%c0_14, %c1, %c0_15] : memref<1x37x128xf32, #tpu.memory_space<vmem>>, vector<1x35x128xf32>
    %22 = vector.shape_cast %21 : vector<1x35x128xf32> to vector<35x128xf32>
    %23 = vector.shape_cast %20 : vector<35x128xf32> to vector<1x35x128xf32>
    tpu.vector_store %arg5[%c0_14, %c1, %c0_15], %23 {strides = array<i32>} : memref<1x37x128xf32, #tpu.memory_space<vmem>>, vector<1x35x128xf32>,
    %24 = vector.extract_strided_slice %6 {offsets = [35, 0], sizes = [1, 128], strides = [1, 1]} : vector<36x128xf32> to vector<1x128xf32>
    %25 = arith.addf %24, %2 : vector<1x128xf32>
    %cst_16 = arith.constant 0.000000e+00 : f32
    %26 = vector.broadcast %cst_16 : f32 to vector<1x128xf32>
    %27 = arith.maximumf %25, %26 : vector<1x128xf32>
    %c0_17 = arith.constant 0 : index
    %c36 = arith.constant 36 : index
    %c0_18 = arith.constant 0 : index
    %28 = vector.load %arg5[%c0_17, %c36, %c0_18] : memref<1x37x128xf32, #tpu.memory_space<vmem>>, vector<1x1x128xf32>
    %29 = vector.shape_cast %28 : vector<1x1x128xf32> to vector<1x128xf32>
    %30 = vector.shape_cast %27 : vector<1x128xf32> to vector<1x1x128xf32>
    tpu.vector_store %arg5[%c0_17, %c36, %c0_18], %30 {strides = array<i32>} : memref<1x37x128xf32, #tpu.memory_space<vmem>>, vector<1x1x128xf32>,
    return
  }
  func.func @transform_0(%arg0: i32) -> (i32, i32, i32) {
    %c0_i32 = arith.constant 0 : i32
    %c0_i32_0 = arith.constant 0 : i32
    %c0_i32_1 = arith.constant 0 : i32
    return %arg0, %c0_i32, %c0_i32_0 : i32, i32, i32
  }
  func.func @transform_1(%arg0: i32) -> (i32, i32) {
    %c0_i32 = arith.constant 0 : i32
    %c0_i32_0 = arith.constant 0 : i32
    %c0_i32_1 = arith.constant 0 : i32
    return %c0_i32, %c0_i32_0 : i32, i32
  }
  func.func @transform_2(%arg0: i32) -> (i32, i32) {
    %c0_i32 = arith.constant 0 : i32
    %c0_i32_0 = arith.constant 0 : i32
    %c0_i32_1 = arith.constant 0 : i32
    return %c0_i32, %c0_i32_0 : i32, i32
  }
  func.func @transform_3(%arg0: i32) -> (i32, i32) {
    %c0_i32 = arith.constant 0 : i32
    %c0_i32_0 = arith.constant 0 : i32
    %c0_i32_1 = arith.constant 0 : i32
    return %c0_i32, %c0_i32_0 : i32, i32
  }
  func.func @transform_4(%arg0: i32) -> (i32, i32, i32) {
    %c0_i32 = arith.constant 0 : i32
    %c0_i32_0 = arith.constant 0 : i32
    %c0_i32_1 = arith.constant 0 : i32
    return %arg0, %c0_i32, %c0_i32_0 : i32, i32, i32
  }
}

module attributes {stable_mosaic.version = 11 : i64} {
  func.func @_deconv_relu_kernel(%arg0: i32, %arg1: memref<1x8x32xf32, #tpu.memory_space<vmem>>, %arg2: memref<32x128xf32, #tpu.memory_space<vmem>>, %arg3: memref<32x128xf32, #tpu.memory_space<vmem>>, %arg4: memref<1x128xf32, #tpu.memory_space<vmem>>, %arg5: memref<1x9x128xf32, #tpu.memory_space<vmem>>) attributes {dimension_semantics = [#tpu.dimension_semantics<parallel>], iteration_bounds = array<i64: 2>, scalar_prefetch = 0 : i64, scratch_operands = 0 : i64, tpu.core_type = #tpu.core_type<tc>, window_params = [{transform_indices = @transform_0, window_bounds = array<i64: 1, 8, 32>}, {pipeline_mode = #tpu.pipeline_mode<synchronous>, transform_indices = @transform_1, window_bounds = array<i64: 32, 128>}, {pipeline_mode = #tpu.pipeline_mode<synchronous>, transform_indices = @transform_2, window_bounds = array<i64: 32, 128>}, {pipeline_mode = #tpu.pipeline_mode<synchronous>, transform_indices = @transform_3, window_bounds = array<i64: 1, 128>}, {transform_indices = @transform_4, window_bounds = array<i64: 1, 9, 128>}]} {
    %c0 = arith.constant 0 : index
    %c0_0 = arith.constant 0 : index
    %c0_1 = arith.constant 0 : index
    %0 = vector.load %arg1[%c0, %c0_0, %c0_1] : memref<1x8x32xf32, #tpu.memory_space<vmem>>, vector<1x8x32xf32>
    %1 = vector.shape_cast %0 : vector<1x8x32xf32> to vector<8x32xf32>
    %c0_2 = arith.constant 0 : index
    %c0_3 = arith.constant 0 : index
    %2 = vector.load %arg4[%c0_2, %c0_3] : memref<1x128xf32, #tpu.memory_space<vmem>>, vector<1x128xf32>
    %c0_4 = arith.constant 0 : index
    %c0_5 = arith.constant 0 : index
    %3 = vector.load %arg2[%c0_4, %c0_5] : memref<32x128xf32, #tpu.memory_space<vmem>>, vector<32x128xf32>
    %cst = arith.constant dense<0.000000e+00> : vector<8x128xf32>
    %4 = tpu.matmul %1, %3, %cst {dimension_numbers = #tpu.dot_dimension_numbers<[1], [0], [0], [1], [0, 0, 1, 1], [], []>} : vector<8x32xf32>, vector<32x128xf32>, vector<8x128xf32> -> vector<8x128xf32>
    %c0_6 = arith.constant 0 : index
    %c0_7 = arith.constant 0 : index
    %5 = vector.load %arg3[%c0_6, %c0_7] : memref<32x128xf32, #tpu.memory_space<vmem>>, vector<32x128xf32>
    %cst_8 = arith.constant dense<0.000000e+00> : vector<8x128xf32>
    %6 = tpu.matmul %1, %5, %cst_8 {dimension_numbers = #tpu.dot_dimension_numbers<[1], [0], [0], [1], [0, 0, 1, 1], [], []>} : vector<8x32xf32>, vector<32x128xf32>, vector<8x128xf32> -> vector<8x128xf32>
    %7 = vector.extract_strided_slice %4 {offsets = [0, 0], sizes = [1, 128], strides = [1, 1]} : vector<8x128xf32> to vector<1x128xf32>
    %8 = arith.addf %7, %2 : vector<1x128xf32>
    %cst_9 = arith.constant 0.000000e+00 : f32
    %9 = vector.broadcast %cst_9 : f32 to vector<1x128xf32>
    %10 = arith.maximumf %8, %9 : vector<1x128xf32>
    %c0_10 = arith.constant 0 : index
    %c0_11 = arith.constant 0 : index
    %c0_12 = arith.constant 0 : index
    %11 = vector.load %arg5[%c0_10, %c0_11, %c0_12] : memref<1x9x128xf32, #tpu.memory_space<vmem>>, vector<1x1x128xf32>
    %12 = vector.shape_cast %11 : vector<1x1x128xf32> to vector<1x128xf32>
    %13 = vector.shape_cast %10 : vector<1x128xf32> to vector<1x1x128xf32>
    tpu.vector_store %arg5[%c0_10, %c0_11, %c0_12], %13 {strides = array<i32>} : memref<1x9x128xf32, #tpu.memory_space<vmem>>, vector<1x1x128xf32>,
    %14 = vector.extract_strided_slice %4 {offsets = [1, 0], sizes = [7, 128], strides = [1, 1]} : vector<8x128xf32> to vector<7x128xf32>
    %15 = vector.extract_strided_slice %6 {offsets = [0, 0], sizes = [7, 128], strides = [1, 1]} : vector<8x128xf32> to vector<7x128xf32>
    %16 = arith.addf %14, %15 : vector<7x128xf32>
    %17 = vector.broadcast %2 : vector<1x128xf32> to vector<7x128xf32>
    %18 = arith.addf %16, %17 : vector<7x128xf32>
    %cst_13 = arith.constant 0.000000e+00 : f32
    %19 = vector.broadcast %cst_13 : f32 to vector<7x128xf32>
    %20 = arith.maximumf %18, %19 : vector<7x128xf32>
    %c0_14 = arith.constant 0 : index
    %c1 = arith.constant 1 : index
    %c0_15 = arith.constant 0 : index
    %21 = vector.load %arg5[%c0_14, %c1, %c0_15] : memref<1x9x128xf32, #tpu.memory_space<vmem>>, vector<1x7x128xf32>
    %22 = vector.shape_cast %21 : vector<1x7x128xf32> to vector<7x128xf32>
    %23 = vector.shape_cast %20 : vector<7x128xf32> to vector<1x7x128xf32>
    tpu.vector_store %arg5[%c0_14, %c1, %c0_15], %23 {strides = array<i32>} : memref<1x9x128xf32, #tpu.memory_space<vmem>>, vector<1x7x128xf32>,
    %24 = vector.extract_strided_slice %6 {offsets = [7, 0], sizes = [1, 128], strides = [1, 1]} : vector<8x128xf32> to vector<1x128xf32>
    %25 = arith.addf %24, %2 : vector<1x128xf32>
    %cst_16 = arith.constant 0.000000e+00 : f32
    %26 = vector.broadcast %cst_16 : f32 to vector<1x128xf32>
    %27 = arith.maximumf %25, %26 : vector<1x128xf32>
    %c0_17 = arith.constant 0 : index
    %c8 = arith.constant 8 : index
    %c0_18 = arith.constant 0 : index
    %28 = vector.load %arg5[%c0_17, %c8, %c0_18] : memref<1x9x128xf32, #tpu.memory_space<vmem>>, vector<1x1x128xf32>
    %29 = vector.shape_cast %28 : vector<1x1x128xf32> to vector<1x128xf32>
    %30 = vector.shape_cast %27 : vector<1x128xf32> to vector<1x1x128xf32>
    tpu.vector_store %arg5[%c0_17, %c8, %c0_18], %30 {strides = array<i32>} : memref<1x9x128xf32, #tpu.memory_space<vmem>>, vector<1x1x128xf32>,
    return
  }
  func.func @transform_0(%arg0: i32) -> (i32, i32, i32) {
    %c0_i32 = arith.constant 0 : i32
    %c0_i32_0 = arith.constant 0 : i32
    %c0_i32_1 = arith.constant 0 : i32
    return %arg0, %c0_i32, %c0_i32_0 : i32, i32, i32
  }
  func.func @transform_1(%arg0: i32) -> (i32, i32) {
    %c0_i32 = arith.constant 0 : i32
    %c0_i32_0 = arith.constant 0 : i32
    %c0_i32_1 = arith.constant 0 : i32
    return %c0_i32, %c0_i32_0 : i32, i32
  }
  func.func @transform_2(%arg0: i32) -> (i32, i32) {
    %c0_i32 = arith.constant 0 : i32
    %c0_i32_0 = arith.constant 0 : i32
    %c0_i32_1 = arith.constant 0 : i32
    return %c0_i32, %c0_i32_0 : i32, i32
  }
  func.func @transform_3(%arg0: i32) -> (i32, i32) {
    %c0_i32 = arith.constant 0 : i32
    %c0_i32_0 = arith.constant 0 : i32
    %c0_i32_1 = arith.constant 0 : i32
    return %c0_i32, %c0_i32_0 : i32, i32
  }
  func.func @transform_4(%arg0: i32) -> (i32, i32, i32) {
    %c0_i32 = arith.constant 0 : i32
    %c0_i32_0 = arith.constant 0 : i32
    %c0_i32_1 = arith.constant 0 : i32
    return %arg0, %c0_i32, %c0_i32_0 : i32, i32, i32
  }
}

module attributes {stable_mosaic.version = 11 : i64} {
  func.func @_deconv_relu_kernel(%arg0: i32, %arg1: memref<1x148x32xf32, #tpu.memory_space<vmem>>, %arg2: memref<32x128xf32, #tpu.memory_space<vmem>>, %arg3: memref<32x128xf32, #tpu.memory_space<vmem>>, %arg4: memref<1x128xf32, #tpu.memory_space<vmem>>, %arg5: memref<1x149x128xf32, #tpu.memory_space<vmem>>) attributes {dimension_semantics = [#tpu.dimension_semantics<parallel>], iteration_bounds = array<i64: 2>, scalar_prefetch = 0 : i64, scratch_operands = 0 : i64, tpu.core_type = #tpu.core_type<tc>, window_params = [{transform_indices = @transform_0, window_bounds = array<i64: 1, 148, 32>}, {pipeline_mode = #tpu.pipeline_mode<synchronous>, transform_indices = @transform_1, window_bounds = array<i64: 32, 128>}, {pipeline_mode = #tpu.pipeline_mode<synchronous>, transform_indices = @transform_2, window_bounds = array<i64: 32, 128>}, {pipeline_mode = #tpu.pipeline_mode<synchronous>, transform_indices = @transform_3, window_bounds = array<i64: 1, 128>}, {transform_indices = @transform_4, window_bounds = array<i64: 1, 149, 128>}]} {
    %c0 = arith.constant 0 : index
    %c0_0 = arith.constant 0 : index
    %c0_1 = arith.constant 0 : index
    %0 = vector.load %arg1[%c0, %c0_0, %c0_1] : memref<1x148x32xf32, #tpu.memory_space<vmem>>, vector<1x148x32xf32>
    %1 = vector.shape_cast %0 : vector<1x148x32xf32> to vector<148x32xf32>
    %c0_2 = arith.constant 0 : index
    %c0_3 = arith.constant 0 : index
    %2 = vector.load %arg4[%c0_2, %c0_3] : memref<1x128xf32, #tpu.memory_space<vmem>>, vector<1x128xf32>
    %c0_4 = arith.constant 0 : index
    %c0_5 = arith.constant 0 : index
    %3 = vector.load %arg2[%c0_4, %c0_5] : memref<32x128xf32, #tpu.memory_space<vmem>>, vector<32x128xf32>
    %cst = arith.constant dense<0.000000e+00> : vector<148x128xf32>
    %4 = tpu.matmul %1, %3, %cst {dimension_numbers = #tpu.dot_dimension_numbers<[1], [0], [0], [1], [0, 0, 1, 1], [], []>} : vector<148x32xf32>, vector<32x128xf32>, vector<148x128xf32> -> vector<148x128xf32>
    %c0_6 = arith.constant 0 : index
    %c0_7 = arith.constant 0 : index
    %5 = vector.load %arg3[%c0_6, %c0_7] : memref<32x128xf32, #tpu.memory_space<vmem>>, vector<32x128xf32>
    %cst_8 = arith.constant dense<0.000000e+00> : vector<148x128xf32>
    %6 = tpu.matmul %1, %5, %cst_8 {dimension_numbers = #tpu.dot_dimension_numbers<[1], [0], [0], [1], [0, 0, 1, 1], [], []>} : vector<148x32xf32>, vector<32x128xf32>, vector<148x128xf32> -> vector<148x128xf32>
    %7 = vector.extract_strided_slice %4 {offsets = [0, 0], sizes = [1, 128], strides = [1, 1]} : vector<148x128xf32> to vector<1x128xf32>
    %8 = arith.addf %7, %2 : vector<1x128xf32>
    %cst_9 = arith.constant 0.000000e+00 : f32
    %9 = vector.broadcast %cst_9 : f32 to vector<1x128xf32>
    %10 = arith.maximumf %8, %9 : vector<1x128xf32>
    %c0_10 = arith.constant 0 : index
    %c0_11 = arith.constant 0 : index
    %c0_12 = arith.constant 0 : index
    %11 = vector.load %arg5[%c0_10, %c0_11, %c0_12] : memref<1x149x128xf32, #tpu.memory_space<vmem>>, vector<1x1x128xf32>
    %12 = vector.shape_cast %11 : vector<1x1x128xf32> to vector<1x128xf32>
    %13 = vector.shape_cast %10 : vector<1x128xf32> to vector<1x1x128xf32>
    tpu.vector_store %arg5[%c0_10, %c0_11, %c0_12], %13 {strides = array<i32>} : memref<1x149x128xf32, #tpu.memory_space<vmem>>, vector<1x1x128xf32>,
    %14 = vector.extract_strided_slice %4 {offsets = [1, 0], sizes = [147, 128], strides = [1, 1]} : vector<148x128xf32> to vector<147x128xf32>
    %15 = vector.extract_strided_slice %6 {offsets = [0, 0], sizes = [147, 128], strides = [1, 1]} : vector<148x128xf32> to vector<147x128xf32>
    %16 = arith.addf %14, %15 : vector<147x128xf32>
    %17 = vector.broadcast %2 : vector<1x128xf32> to vector<147x128xf32>
    %18 = arith.addf %16, %17 : vector<147x128xf32>
    %cst_13 = arith.constant 0.000000e+00 : f32
    %19 = vector.broadcast %cst_13 : f32 to vector<147x128xf32>
    %20 = arith.maximumf %18, %19 : vector<147x128xf32>
    %c0_14 = arith.constant 0 : index
    %c1 = arith.constant 1 : index
    %c0_15 = arith.constant 0 : index
    %21 = vector.load %arg5[%c0_14, %c1, %c0_15] : memref<1x149x128xf32, #tpu.memory_space<vmem>>, vector<1x147x128xf32>
    %22 = vector.shape_cast %21 : vector<1x147x128xf32> to vector<147x128xf32>
    %23 = vector.shape_cast %20 : vector<147x128xf32> to vector<1x147x128xf32>
    tpu.vector_store %arg5[%c0_14, %c1, %c0_15], %23 {strides = array<i32>} : memref<1x149x128xf32, #tpu.memory_space<vmem>>, vector<1x147x128xf32>,
    %24 = vector.extract_strided_slice %6 {offsets = [147, 0], sizes = [1, 128], strides = [1, 1]} : vector<148x128xf32> to vector<1x128xf32>
    %25 = arith.addf %24, %2 : vector<1x128xf32>
    %cst_16 = arith.constant 0.000000e+00 : f32
    %26 = vector.broadcast %cst_16 : f32 to vector<1x128xf32>
    %27 = arith.maximumf %25, %26 : vector<1x128xf32>
    %c0_17 = arith.constant 0 : index
    %c148 = arith.constant 148 : index
    %c0_18 = arith.constant 0 : index
    %28 = vector.load %arg5[%c0_17, %c148, %c0_18] : memref<1x149x128xf32, #tpu.memory_space<vmem>>, vector<1x1x128xf32>
    %29 = vector.shape_cast %28 : vector<1x1x128xf32> to vector<1x128xf32>
    %30 = vector.shape_cast %27 : vector<1x128xf32> to vector<1x1x128xf32>
    tpu.vector_store %arg5[%c0_17, %c148, %c0_18], %30 {strides = array<i32>} : memref<1x149x128xf32, #tpu.memory_space<vmem>>, vector<1x1x128xf32>,
    return
  }
  func.func @transform_0(%arg0: i32) -> (i32, i32, i32) {
    %c0_i32 = arith.constant 0 : i32
    %c0_i32_0 = arith.constant 0 : i32
    %c0_i32_1 = arith.constant 0 : i32
    return %arg0, %c0_i32, %c0_i32_0 : i32, i32, i32
  }
  func.func @transform_1(%arg0: i32) -> (i32, i32) {
    %c0_i32 = arith.constant 0 : i32
    %c0_i32_0 = arith.constant 0 : i32
    %c0_i32_1 = arith.constant 0 : i32
    return %c0_i32, %c0_i32_0 : i32, i32
  }
  func.func @transform_2(%arg0: i32) -> (i32, i32) {
    %c0_i32 = arith.constant 0 : i32
    %c0_i32_0 = arith.constant 0 : i32
    %c0_i32_1 = arith.constant 0 : i32
    return %c0_i32, %c0_i32_0 : i32, i32
  }
  func.func @transform_3(%arg0: i32) -> (i32, i32) {
    %c0_i32 = arith.constant 0 : i32
    %c0_i32_0 = arith.constant 0 : i32
    %c0_i32_1 = arith.constant 0 : i32
    return %c0_i32, %c0_i32_0 : i32, i32
  }
  func.func @transform_4(%arg0: i32) -> (i32, i32, i32) {
    %c0_i32 = arith.constant 0 : i32
    %c0_i32_0 = arith.constant 0 : i32
    %c0_i32_1 = arith.constant 0 : i32
    return %arg0, %c0_i32, %c0_i32_0 : i32, i32, i32
  }
}

module attributes {stable_mosaic.version = 11 : i64} {
  func.func @_deconv_relu_kernel(%arg0: i32, %arg1: memref<1x596x32xf32, #tpu.memory_space<vmem>>, %arg2: memref<32x128xf32, #tpu.memory_space<vmem>>, %arg3: memref<32x128xf32, #tpu.memory_space<vmem>>, %arg4: memref<1x128xf32, #tpu.memory_space<vmem>>, %arg5: memref<1x597x128xf32, #tpu.memory_space<vmem>>) attributes {dimension_semantics = [#tpu.dimension_semantics<parallel>], iteration_bounds = array<i64: 2>, scalar_prefetch = 0 : i64, scratch_operands = 0 : i64, tpu.core_type = #tpu.core_type<tc>, window_params = [{transform_indices = @transform_0, window_bounds = array<i64: 1, 596, 32>}, {pipeline_mode = #tpu.pipeline_mode<synchronous>, transform_indices = @transform_1, window_bounds = array<i64: 32, 128>}, {pipeline_mode = #tpu.pipeline_mode<synchronous>, transform_indices = @transform_2, window_bounds = array<i64: 32, 128>}, {pipeline_mode = #tpu.pipeline_mode<synchronous>, transform_indices = @transform_3, window_bounds = array<i64: 1, 128>}, {transform_indices = @transform_4, window_bounds = array<i64: 1, 597, 128>}]} {
    %c0 = arith.constant 0 : index
    %c0_0 = arith.constant 0 : index
    %c0_1 = arith.constant 0 : index
    %0 = vector.load %arg1[%c0, %c0_0, %c0_1] : memref<1x596x32xf32, #tpu.memory_space<vmem>>, vector<1x596x32xf32>
    %1 = vector.shape_cast %0 : vector<1x596x32xf32> to vector<596x32xf32>
    %c0_2 = arith.constant 0 : index
    %c0_3 = arith.constant 0 : index
    %2 = vector.load %arg4[%c0_2, %c0_3] : memref<1x128xf32, #tpu.memory_space<vmem>>, vector<1x128xf32>
    %c0_4 = arith.constant 0 : index
    %c0_5 = arith.constant 0 : index
    %3 = vector.load %arg2[%c0_4, %c0_5] : memref<32x128xf32, #tpu.memory_space<vmem>>, vector<32x128xf32>
    %cst = arith.constant dense<0.000000e+00> : vector<596x128xf32>
    %4 = tpu.matmul %1, %3, %cst {dimension_numbers = #tpu.dot_dimension_numbers<[1], [0], [0], [1], [0, 0, 1, 1], [], []>} : vector<596x32xf32>, vector<32x128xf32>, vector<596x128xf32> -> vector<596x128xf32>
    %c0_6 = arith.constant 0 : index
    %c0_7 = arith.constant 0 : index
    %5 = vector.load %arg3[%c0_6, %c0_7] : memref<32x128xf32, #tpu.memory_space<vmem>>, vector<32x128xf32>
    %cst_8 = arith.constant dense<0.000000e+00> : vector<596x128xf32>
    %6 = tpu.matmul %1, %5, %cst_8 {dimension_numbers = #tpu.dot_dimension_numbers<[1], [0], [0], [1], [0, 0, 1, 1], [], []>} : vector<596x32xf32>, vector<32x128xf32>, vector<596x128xf32> -> vector<596x128xf32>
    %7 = vector.extract_strided_slice %4 {offsets = [0, 0], sizes = [1, 128], strides = [1, 1]} : vector<596x128xf32> to vector<1x128xf32>
    %8 = arith.addf %7, %2 : vector<1x128xf32>
    %cst_9 = arith.constant 0.000000e+00 : f32
    %9 = vector.broadcast %cst_9 : f32 to vector<1x128xf32>
    %10 = arith.maximumf %8, %9 : vector<1x128xf32>
    %c0_10 = arith.constant 0 : index
    %c0_11 = arith.constant 0 : index
    %c0_12 = arith.constant 0 : index
    %11 = vector.load %arg5[%c0_10, %c0_11, %c0_12] : memref<1x597x128xf32, #tpu.memory_space<vmem>>, vector<1x1x128xf32>
    %12 = vector.shape_cast %11 : vector<1x1x128xf32> to vector<1x128xf32>
    %13 = vector.shape_cast %10 : vector<1x128xf32> to vector<1x1x128xf32>
    tpu.vector_store %arg5[%c0_10, %c0_11, %c0_12], %13 {strides = array<i32>} : memref<1x597x128xf32, #tpu.memory_space<vmem>>, vector<1x1x128xf32>,
    %14 = vector.extract_strided_slice %4 {offsets = [1, 0], sizes = [595, 128], strides = [1, 1]} : vector<596x128xf32> to vector<595x128xf32>
    %15 = vector.extract_strided_slice %6 {offsets = [0, 0], sizes = [595, 128], strides = [1, 1]} : vector<596x128xf32> to vector<595x128xf32>
    %16 = arith.addf %14, %15 : vector<595x128xf32>
    %17 = vector.broadcast %2 : vector<1x128xf32> to vector<595x128xf32>
    %18 = arith.addf %16, %17 : vector<595x128xf32>
    %cst_13 = arith.constant 0.000000e+00 : f32
    %19 = vector.broadcast %cst_13 : f32 to vector<595x128xf32>
    %20 = arith.maximumf %18, %19 : vector<595x128xf32>
    %c0_14 = arith.constant 0 : index
    %c1 = arith.constant 1 : index
    %c0_15 = arith.constant 0 : index
    %21 = vector.load %arg5[%c0_14, %c1, %c0_15] : memref<1x597x128xf32, #tpu.memory_space<vmem>>, vector<1x595x128xf32>
    %22 = vector.shape_cast %21 : vector<1x595x128xf32> to vector<595x128xf32>
    %23 = vector.shape_cast %20 : vector<595x128xf32> to vector<1x595x128xf32>
    tpu.vector_store %arg5[%c0_14, %c1, %c0_15], %23 {strides = array<i32>} : memref<1x597x128xf32, #tpu.memory_space<vmem>>, vector<1x595x128xf32>,
    %24 = vector.extract_strided_slice %6 {offsets = [595, 0], sizes = [1, 128], strides = [1, 1]} : vector<596x128xf32> to vector<1x128xf32>
    %25 = arith.addf %24, %2 : vector<1x128xf32>
    %cst_16 = arith.constant 0.000000e+00 : f32
    %26 = vector.broadcast %cst_16 : f32 to vector<1x128xf32>
    %27 = arith.maximumf %25, %26 : vector<1x128xf32>
    %c0_17 = arith.constant 0 : index
    %c596 = arith.constant 596 : index
    %c0_18 = arith.constant 0 : index
    %28 = vector.load %arg5[%c0_17, %c596, %c0_18] : memref<1x597x128xf32, #tpu.memory_space<vmem>>, vector<1x1x128xf32>
    %29 = vector.shape_cast %28 : vector<1x1x128xf32> to vector<1x128xf32>
    %30 = vector.shape_cast %27 : vector<1x128xf32> to vector<1x1x128xf32>
    tpu.vector_store %arg5[%c0_17, %c596, %c0_18], %30 {strides = array<i32>} : memref<1x597x128xf32, #tpu.memory_space<vmem>>, vector<1x1x128xf32>,
    return
  }
  func.func @transform_0(%arg0: i32) -> (i32, i32, i32) {
    %c0_i32 = arith.constant 0 : i32
    %c0_i32_0 = arith.constant 0 : i32
    %c0_i32_1 = arith.constant 0 : i32
    return %arg0, %c0_i32, %c0_i32_0 : i32, i32, i32
  }
  func.func @transform_1(%arg0: i32) -> (i32, i32) {
    %c0_i32 = arith.constant 0 : i32
    %c0_i32_0 = arith.constant 0 : i32
    %c0_i32_1 = arith.constant 0 : i32
    return %c0_i32, %c0_i32_0 : i32, i32
  }
  func.func @transform_2(%arg0: i32) -> (i32, i32) {
    %c0_i32 = arith.constant 0 : i32
    %c0_i32_0 = arith.constant 0 : i32
    %c0_i32_1 = arith.constant 0 : i32
    return %c0_i32, %c0_i32_0 : i32, i32
  }
  func.func @transform_3(%arg0: i32) -> (i32, i32) {
    %c0_i32 = arith.constant 0 : i32
    %c0_i32_0 = arith.constant 0 : i32
    %c0_i32_1 = arith.constant 0 : i32
    return %c0_i32, %c0_i32_0 : i32, i32
  }
  func.func @transform_4(%arg0: i32) -> (i32, i32, i32) {
    %c0_i32 = arith.constant 0 : i32
    %c0_i32_0 = arith.constant 0 : i32
    %c0_i32_1 = arith.constant 0 : i32
    return %arg0, %c0_i32, %c0_i32_0 : i32, i32, i32
  }
}

</mosaic_0001>

<bundles_post_ra>
// kernel: tile.23
= control target key start
LH: loop header
LB: loop body
LE: loop exit
PB: predicated region body
PF: predicated region fallthrough
CT: control target
= control target key end

     0   :  { %2 = vsyncpa [#allocation1], 0  ;;  %s48_s8 = smov [#allocation0]   ;;  %s65_s0 = inlined_call_operand.hbm [shape: f32[32], index: 0, kind: input, shape index: {}]   ;;  %s66_s1 = inlined_call_operand.vmem [shape: f32[4,32], index: 1, kind: output, shape index: {}]  }
   0x1   :  { %s8_s0 = sshll.u32 %s65_s0, 4  ;;  %s10_s9 = sshll.u32 %s48_s8, 4  ;;  %s9_s0 = int_to_ptr.hbm [resolvable:$true] %s8_s0  ;;  %s11_s9 = int_to_ptr.vmem [resolvable:$true] %s10_s9 }
   0x2   :  { %13 = dma.hbm_to_vmem [thread:$0]  %s9_s0, 16, %s11_s9, [#allocation1]  }
   0x3   :  { %46 = dma.done.wait [#allocation1], 16  }
   0x4   :  { %47 = vsyncadd [#allocation1], 4294967280  ;;  %v18_v0 = vld [vmem:[#allocation0] ss:$0 sm:$0xff] }
   0x5   :  { %19 = vst [vmem:[%s66_s1] sm:$0xf] %v18_v0 }
   0x6   :  { %20 = vsyncpa [#allocation1], 1 }

// kernel: tile.24
= control target key start
LH: loop header
LB: loop body
LE: loop exit
PB: predicated region body
PF: predicated region fallthrough
CT: control target
= control target key end

     0   :  { %s37_s8 = smov 32   ;;  %s38_s9 = smov 64   ;;  %vm7_vm0 = vcmask 261120   ;;  %vm13_vm1 = vcmask 1048320   ;;  %vm19_vm2 = vcmask 785920   ;;  %vm25_vm3 = vcmask 523520   ;;  %s55_s0 = inlined_call_operand.vmem [shape: f32[4,32], index: 0, kind: input, shape index: {}]   ;;  %s56_s1 = inlined_call_operand.vmem [shape: f32[1,128], index: 1, kind: output, shape index: {}]  }
   0x1   :  { %v4_v0 = vld [vmem:[%s55_s0] sm:$0xf]  ;;  %s36_s0 = smov 96  }
   0x2   :  { %5 = vst [vmem:[#allocation1] sm:$0xf] %v4_v0 }
   0x9   :  { %v10_v1 = vld [vmem:[#allocation1 + $0x3] sm:$0x1]   ;;  %v22_v2 = vld [vmem:[#allocation1 + $0x1] sm:$0x1]   ;;  %v16_v3 = vld [vmem:[#allocation1 + $0x2] sm:$0x1]  }
   0xa   :  { %11 = vrot.lane.b32.xlu0 %v10_v1, %s36_s0  ;;  %23 = vrot.lane.b32.xlu1 %v22_v2, %s37_s8  ;;  %v6_v4 = vld [vmem:[#allocation1] sm:$0x1]  }
   0xb   :  { %8 = vst.msk [vmem:[#allocation0] sm:$0x1] %vm7_vm0, %v6_v4  }
  0x12   :  { %17 = vrot.lane.b32.xlu0 %v16_v3, %s38_s9 }
  0x7c   :  { %v12_v5 = vpop.permute.xlu0 %11   ;;  %v24_v6 = vpop.permute.xlu1 %23  }
  0x7d   :  { %14 = vst.msk [vmem:[#allocation0] sm:$0x1] %vm13_vm1, %v12_v5  }
  0x84   :  { %v18_v7 = vpop.permute.xlu0 %17  }
  0x85   :  { %20 = vst.msk [vmem:[#allocation0] sm:$0x1] %vm19_vm2, %v18_v7  }
  0x86   :  { %26 = vst.msk [vmem:[#allocation0] sm:$0x1] %vm25_vm3, %v24_v6  }
  0x8d   :  { %v29_v8 = vld [vmem:[#allocation0] sm:$0x1] }
  0x8e   :  { %32 = vst [vmem:[%s56_s1] sm:$0x1] %v29_v8 }

// kernel: tile.38
= control target key start
LH: loop header
LB: loop body
LE: loop exit
PB: predicated region body
PF: predicated region fallthrough
CT: control target
= control target key end

     0   :  { %s22_s0 = inlined_call_operand.vmem [shape: f32[32], index: 0, kind: input, shape index: {}]   ;;  %s23_s1 = inlined_call_operand.vmem [shape: f32[4,32], index: 1, kind: output, shape index: {}]  }
   0x1   :  { %v4_v0 = vld [vmem:[%s22_s0] ss:$0 sm:$0xff] }
   0x2   :  { %5 = vst [vmem:[%s23_s1] sm:$0xf] %v4_v0 }

// kernel: sentence_embedding_heads.5
= control target key start
LH: loop header
LB: loop body
LE: loop exit
PB: predicated region body
PF: predicated region fallthrough
CT: control target
= control target key end

     0   :  { %s466_s15 = smov 0   ;;  %s543_s0 = inlined_call_operand.vmem [shape: f32[2,36,32], index: 0, kind: input, shape index: {}]   ;;  %s544_s1 = inlined_call_operand.vmem [shape: f32[32,128], index: 1, kind: input, shape index: {}]   ;;  %s545_s2 = inlined_call_operand.vmem [shape: f32[32,128], index: 2, kind: input, shape index: {}]   ;;  %s546_s3 = inlined_call_operand.vmem [shape: f32[1,128], index: 3, kind: input, shape index: {}]   ;;  %s547_s4 = inlined_call_operand.vmem [shape: f32[2,37,128], index: 4, kind: output, shape index: {}]  }
   0x1 LB: > { %s396_s16 = sadd.s32 4294967295, %s439_s15   ;;  %p400_p0 = scmp.ge.s32.totalorder %s439_s15, 1  ;;  %s439_s15 = sphi %s466_s15, %s14_s15  }
   0x2   : > { %p162_p1 = scmp.lt.s32.totalorder %s439_s15, 3 }
   0x4   : > { %p163_p2 = pnand %p400_p0, %p162_p1 }
   0x5   : > { %p188_p3 = scmp.lt.s32.totalorder (!%p163_p2), %s396_s16, 1 }
   0x6   : > { %166 = sbr.rel (%p163_p2) target bundleno = 172 (0xac), region = 36 }
   0xb   : > { %v259_v0 = vld [vmem:[%s545_s2 + $0x18] sm:$0xff]  ;;  %v258_v2 = vld [vmem:[%s545_s2 + $0x10] sm:$0xff]  ;;  %v257_v4 = vld [vmem:[%s545_s2 + $0x8] sm:$0xff]  ;;  %s549_s16 = smov (!%p188_p3, %s396_s16), 1  ;;  %vm208_vm0 = vcmask 261120   ;;  %vm300_vm1 = vcmask 1040384  }
   0xc   : > { %v207_v1 = vld [vmem:[%s544_s1 + $0x18] sm:$0xff]  ;;  %272 = vmatpush.msra.mxu1 %v259_v0  ;;  %419 = vmatpush.msra.mxu3 %v259_v0  ;;  %v206_v3 = vld [vmem:[%s544_s1 + $0x10] sm:$0xff]  ;;  %v205_v5 = vld [vmem:[%s544_s1 + $0x8] sm:$0xff]  ;;  %s423_s5 = smul.u32 40, %s549_s16 }
   0xd   : > { %236 = vmatpush.msra.mxu0 %v207_v1  ;;  %415 = vmatpush.msra.mxu2 %v207_v1  ;;  %v256_v6 = vld [vmem:[%s545_s2] sm:$0xff] }
   0xe   : > { %273 = vmatpush.msra.mxu1 %v258_v2  ;;  %420 = vmatpush.msra.mxu3 %v258_v2  ;;  %s192_s8 = scalar_lea.vmem %s543_s0, %s423_s5  ;;  %v204_v7 = vld [vmem:[%s544_s1] sm:$0xff]  ;;  %s527_s19 = scalar_lea.vmem %s547_s4, %s423_s5 }
   0xf   : > { %237 = vmatpush.msra.mxu0 %v206_v3  ;;  %416 = vmatpush.msra.mxu2 %v206_v3  ;;  %v198_v8 = vld [vmem:[%s192_s8] sm:$0xff]  ;;  %v201_v9 = vld [vmem:[%s192_s8 + $0x18] sm:$0xff]  ;;  %v199_v10 = vld [vmem:[%s192_s8 + $0x8] sm:$0xff] }
  0x10   : > { %274 = vmatpush.msra.mxu1 %v257_v4  ;;  %421 = vmatpush.msra.mxu3 %v257_v4  ;;  %v202_v11 = vld [vmem:[%s192_s8 + $0x20] sm:$0xf]  ;;  %v200_v12 = vld [vmem:[%s192_s8 + $0x10] sm:$0xff] }
  0x11   : > { %238 = vmatpush.msra.mxu0 %v205_v5  ;;  %417 = vmatpush.msra.mxu2 %v205_v5  ;;  %v203_v14 = vld [vmem:[%s546_s3] sm:$0x1] }
  0x12   : > { %275 = vmatpush.msra.mxu1 %v256_v6  ;;  %422 = vmatpush.msra.mxu3 %v256_v6  ;;  %v432_v16 = vld [vmem:[%s546_s3] ss:$0 sm:$0xff] }
  0x13   : > { %408 = vmatmul.msk.f32.vlgmr.msra.gmra.mxu1 %vm208_vm0, %v198_v8  ;;  %411 = vmatmul.msk.f32.vlgmr.msra.gmra.mxu3 %vm208_vm0, %v201_v9 }
  0x14   : > { %239 = vmatpush.msra.mxu0 %v204_v7  ;;  %418 = vmatpush.msra.mxu2 %v204_v7 }
  0x15   : > { %403 = vmatmul.msk.f32.vlgmr.msra.gmra.mxu0 %vm208_vm0, %v198_v8  ;;  %406 = vmatmul.msk.f32.vlgmr.msra.gmra.mxu2 %vm208_vm0, %v201_v9 }
  0x1b   : > { %409 = vmatmul.msk.f32.gmra.mxu1 %vm208_vm0, %v199_v10  ;;  %412 = vmatmul.msk.f32.gmra.mxu3 %vm208_vm0, %v202_v11 }
  0x1d   : > { %404 = vmatmul.msk.f32.gmra.mxu0 %vm208_vm0, %v199_v10  ;;  %407 = vmatmul.msk.f32.gmra.mxu2 %vm208_vm0, %v202_v11 }
  0x23   : > { %410 = vmatmul.msk.f32.gmra.mxu1 %vm208_vm0, %v200_v12 }
  0x25   : > { %405 = vmatmul.msk.f32.gmra.mxu0 %vm208_vm0, %v200_v12 }
  0x90   : > { %v277_v13 = vpop.f32.mrf.mxu1 }
  0x91   : > { %v301_v15 = vrot.slane %v277_v13, 7 }
  0x92   : > { %v241_v17 = vpop.f32.mrf.mxu0 }
  0x93   : > { %v292_v18 = vadd.f32 %v241_v17, %v203_v14  ;;  %v315_v19 = vadd.f32 %v301_v15, %v241_v17 }
  0x95   : > { %v293_v20 = vmax.f32 %v292_v18, 0.0  ;;  %v323_v21 = vadd.f32 %v432_v16, %v315_v19 }
  0x96   : > { %v286_v22 = vpop.f32.mrf.mxu3 }
  0x97   : > { %294 = vst [vmem:[%s527_s19] sm:$0x1] %v293_v20  ;;  %v328_v23 = vmax.f32 %v323_v21, 0.0  ;;  %v306_v32 = vrot.slane %v286_v22, 7 }
  0x98   : > { %v280_v24 = vpop.f32.mrf.mxu1  ;;  %v250_v25 = vpop.f32.mrf.mxu2 }
  0x99   : > { %333 = vst [vmem:[%s527_s19] sm:$0xfe] %v328_v23  ;;  %v302_v26 = vrot.slane %v280_v24, 7 }
  0x9a   : > { %v244_v27 = vpop.f32.mrf.mxu0 }
  0x9b   : > { %v303_v28 = vsel %vm300_vm1, %v301_v15, %v302_v26 }
  0x9c   : > { %v316_v29 = vadd.f32 %v303_v28, %v244_v27 }
  0x9e   : > { %v324_v30 = vadd.f32 %v432_v16, %v316_v29  ;;  %v289_v31 = vpop.f32.mrf.mxu3 }
  0x9f   : > { %v308_v33 = vrot.slane %v289_v31, 7  ;;  %v338_v34 = vadd.f32 %v432_v16, %v289_v31 }
  0xa0   : > { %v329_v35 = vmax.f32 %v324_v30, 0.0  ;;  %v283_v36 = vpop.f32.mrf.mxu1  ;;  %v253_v37 = vpop.f32.mrf.mxu2 }
  0xa1   : > { %v339_v38 = vmax.f32 %v338_v34, 0.0  ;;  %v304_v39 = vrot.slane %v283_v36, 7  ;;  %v309_v40 = vsel %vm300_vm1, %v306_v32, %v308_v33 }
  0xa2   : > { %334 = vst [vmem:[%s527_s19 + $0x8] sm:$0xff] %v329_v35  ;;  %v319_v41 = vadd.f32 %v309_v40, %v253_v37  ;;  %v247_v42 = vpop.f32.mrf.mxu0 }
  0xa3   : > { %340 = vst [vmem:[%s527_s19 + $0x21] sm:$0x8] %v339_v38  ;;  %v307_v43 = vsel %vm300_vm1, %v304_v39, %v306_v32  ;;  %v305_v44 = vsel %vm300_vm1, %v302_v26, %v304_v39 }
  0xa4   : > { %v318_v45 = vadd.f32 %v307_v43, %v250_v25  ;;  %v327_v46 = vadd.f32 %v432_v16, %v319_v41  ;;  %v317_v47 = vadd.f32 %v305_v44, %v247_v42 }
  0xa6   : > { %v326_v48 = vadd.f32 %v432_v16, %v318_v45  ;;  %v332_v49 = vmax.f32 %v327_v46, 0.0  ;;  %v325_v50 = vadd.f32 %v432_v16, %v317_v47 }
  0xa8   : > { %v331_v51 = vmax.f32 %v326_v48, 0.0  ;;  %337 = vst [vmem:[%s527_s19 + $0x20] sm:$0xf] %v332_v49  ;;  %v330_v52 = vmax.f32 %v325_v50, 0.0 }
  0xaa   : > { %336 = vst [vmem:[%s527_s19 + $0x18] sm:$0xff] %v331_v51 }
  0xab   : > { %335 = vst [vmem:[%s527_s19 + $0x10] sm:$0xff] %v330_v52 }
  0xac PF: > { %s14_s15 = sadd.s32 1, %s439_s15  }
  0xad   : > { %p11_p4 = scmp.ge.s32.totalorder %s14_s15, 4  }
  0xaf   :  { %13 = sbr.rel (!%p11_p4) target bundleno = 1 (0x1), region = 66 }

// kernel: sentence_embedding_heads.4
= control target key start
LH: loop header
LB: loop body
LE: loop exit
PB: predicated region body
PF: predicated region fallthrough
CT: control target
= control target key end

     0   :  { %s375_s15 = smov 0   ;;  %s422_s0 = inlined_call_operand.vmem [shape: f32[2,8,32], index: 0, kind: input, shape index: {}]   ;;  %s423_s1 = inlined_call_operand.vmem [shape: f32[32,128], index: 1, kind: input, shape index: {}]   ;;  %s424_s2 = inlined_call_operand.vmem [shape: f32[32,128], index: 2, kind: input, shape index: {}]   ;;  %s425_s3 = inlined_call_operand.vmem [shape: f32[1,128], index: 3, kind: input, shape index: {}]   ;;  %s426_s4 = inlined_call_operand.vmem [shape: f32[2,9,128], index: 4, kind: output, shape index: {}]  }
   0x1 LB: > { %s320_s16 = sadd.s32 4294967295, %s348_s15   ;;  %p324_p0 = scmp.ge.s32.totalorder %s348_s15, 1  ;;  %s348_s15 = sphi %s375_s15, %s14_s15  }
   0x2   : > { %p161_p1 = scmp.lt.s32.totalorder %s348_s15, 3 }
   0x4   : > { %p162_p2 = pnand %p324_p0, %p161_p1 }
   0x5   : > { %p186_p3 = scmp.lt.s32.totalorder (!%p162_p2), %s320_s16, 1 }
   0x6   : > { %165 = sbr.rel (%p162_p2) target bundleno = 154 (0x9a), region = 36 }
   0xb   : > { %v228_v0 = vld [vmem:[%s424_s2 + $0x18] sm:$0xff]  ;;  %v227_v2 = vld [vmem:[%s424_s2 + $0x10] sm:$0xff]  ;;  %v226_v4 = vld [vmem:[%s424_s2 + $0x8] sm:$0xff]  ;;  %s428_s16 = smov (!%p186_p3, %s320_s16), 1  ;;  %vm201_vm0 = vcmask 261120  }
   0xc   : > { %v200_v1 = vld [vmem:[%s423_s1 + $0x18] sm:$0xff]  ;;  %241 = vmatpush.msra.mxu1 %v228_v0  ;;  %v199_v3 = vld [vmem:[%s423_s1 + $0x10] sm:$0xff]  ;;  %v198_v5 = vld [vmem:[%s423_s1 + $0x8] sm:$0xff]  ;;  %s325_s5 = sshll.u32 %s428_s16, 3  ;;  %s332_s17 = sshll.u32 %s428_s16, 4 }
   0xd   : > { %217 = vmatpush.msra.mxu0 %v200_v1  ;;  %v225_v6 = vld [vmem:[%s424_s2] sm:$0xff]  ;;  %s189_s10 = scalar_lea.vmem %s422_s0, %s325_s5  ;;  %s194_s20 = scalar_lea.vmem %s426_s4, %s332_s17 }
   0xe   : > { %242 = vmatpush.msra.mxu1 %v227_v2  ;;  %v197_v7 = vld [vmem:[%s423_s1] sm:$0xff] }
   0xf   : > { %218 = vmatpush.msra.mxu0 %v199_v3  ;;  %v195_v8 = vld [vmem:[%s189_s10] sm:$0xff] }
  0x10   : > { %243 = vmatpush.msra.mxu1 %v226_v4  ;;  %v341_v9 = vld [vmem:[%s425_s3] ss:$0 sm:$0xff] }
  0x11   : > { %219 = vmatpush.msra.mxu0 %v198_v5  ;;  %v196_v10 = vld [vmem:[%s425_s3] sm:$0x1] }
  0x12   : > { %244 = vmatpush.msra.mxu1 %v225_v6 }
  0x13   : > { %220 = vmatpush.msra.mxu0 %v197_v7  ;;  %329 = vmatmul.msk.f32.vlgmr.msra.gmra.mxu1 %vm201_vm0, %v195_v8 }
  0x14   : > { %328 = vmatmul.msk.f32.vlgmr.msra.gmra.mxu0 %vm201_vm0, %v195_v8 }
  0x90   : > { %v246_v11 = vpop.f32.mrf.mxu1 }
  0x91   : > { %v222_v12 = vpop.f32.mrf.mxu0  ;;  %v253_v13 = vrot.slane %v246_v11, 7  ;;  %v262_v14 = vadd.f32 %v341_v9, %v246_v11 }
  0x92   : > { %v249_v15 = vadd.f32 %v222_v12, %v196_v10 }
  0x93   : > { %v263_v16 = vmax.f32 %v262_v14, 0.0  ;;  %v255_v18 = vadd.f32 %v253_v13, %v222_v12 }
  0x94   : > { %v250_v17 = vmax.f32 %v249_v15, 0.0 }
  0x95   : > { %264 = vst [vmem:[%s194_s20 + $0x1] sm:$0x80] %v263_v16  ;;  %v259_v19 = vadd.f32 %v341_v9, %v255_v18 }
  0x96   : > { %251 = vst [vmem:[%s194_s20] sm:$0x1] %v250_v17 }
  0x97   : > { %v260_v20 = vmax.f32 %v259_v19, 0.0 }
  0x99   : > { %261 = vst [vmem:[%s194_s20] sm:$0xfe] %v260_v20 }
  0x9a PF: > { %s14_s15 = sadd.s32 1, %s348_s15  }
  0x9b   : > { %p11_p4 = scmp.ge.s32.totalorder %s14_s15, 4  }
  0x9d   :  { %13 = sbr.rel (!%p11_p4) target bundleno = 1 (0x1), region = 66 }

// kernel: sentence_embedding_heads.6
= control target key start
LH: loop header
LB: loop body
LE: loop exit
PB: predicated region body
PF: predicated region fallthrough
CT: control target
= control target key end

     0   :  { %s746_s15 = smov 0   ;;  %s932_s0 = inlined_call_operand.vmem [shape: f32[2,148,32], index: 0, kind: input, shape index: {}]   ;;  %s933_s1 = inlined_call_operand.vmem [shape: f32[32,128], index: 1, kind: input, shape index: {}]   ;;  %s934_s2 = inlined_call_operand.vmem [shape: f32[32,128], index: 2, kind: input, shape index: {}]   ;;  %s935_s3 = inlined_call_operand.vmem [shape: f32[1,128], index: 3, kind: input, shape index: {}]   ;;  %s936_s4 = inlined_call_operand.vmem [shape: f32[2,149,128], index: 4, kind: output, shape index: {}]  }
   0x1 LB: > { %s648_s16 = sadd.s32 4294967295, %s719_s15   ;;  %p652_p0 = scmp.ge.s32.totalorder %s719_s15, 1  ;;  %s719_s15 = sphi %s746_s15, %s14_s15  }
   0x2   : > { %p162_p1 = scmp.lt.s32.totalorder %s719_s15, 3 }
   0x4   : > { %p163_p2 = pnand %p652_p0, %p162_p1 }
   0x5   : > { %p188_p3 = scmp.lt.s32.totalorder (!%p163_p2), %s648_s16, 1 }
   0x6   : > { %166 = sbr.rel (%p163_p2) target bundleno = 228 (0xe4), region = 36 }
   0xb   : > { %v357_v0 = vld [vmem:[%s934_s2 + $0x18] sm:$0xff]  ;;  %v356_v2 = vld [vmem:[%s934_s2 + $0x10] sm:$0xff]  ;;  %v355_v4 = vld [vmem:[%s934_s2 + $0x8] sm:$0xff]  ;;  %s938_s16 = smov (!%p188_p3, %s648_s16), 1  ;;  %vm222_vm0 = vcmask 261120   ;;  %vm454_vm1 = vcmask 1040384  }
   0xc   : > { %v221_v1 = vld [vmem:[%s933_s1 + $0x18] sm:$0xff]  ;;  %370 = vmatpush.msra.mxu1 %v357_v0  ;;  %699 = vmatpush.msra.mxu3 %v357_v0  ;;  %v220_v3 = vld [vmem:[%s933_s1 + $0x10] sm:$0xff]  ;;  %v219_v5 = vld [vmem:[%s933_s1 + $0x8] sm:$0xff]  ;;  %s703_s5 = smul.u32 152, %s938_s16 }
   0xd   : > { %292 = vmatpush.msra.mxu0 %v221_v1  ;;  %695 = vmatpush.msra.mxu2 %v221_v1  ;;  %v354_v6 = vld [vmem:[%s934_s2] sm:$0xff] }
   0xe   : > { %371 = vmatpush.msra.mxu1 %v356_v2  ;;  %700 = vmatpush.msra.mxu3 %v356_v2  ;;  %s783_s8 = scalar_lea.vmem %s932_s0, %s703_s5  ;;  %v218_v7 = vld [vmem:[%s933_s1] sm:$0xff]  ;;  %s858_s19 = scalar_lea.vmem %s936_s4, %s703_s5 }
   0xf   : > { %293 = vmatpush.msra.mxu0 %v220_v3  ;;  %696 = vmatpush.msra.mxu2 %v220_v3  ;;  %v198_v8 = vld [vmem:[%s783_s8] sm:$0xff]  ;;  %v208_v9 = vld [vmem:[%s783_s8 + $0x50] sm:$0xff]  ;;  %v199_v10 = vld [vmem:[%s783_s8 + $0x8] sm:$0xff] }
  0x10   : > { %372 = vmatpush.msra.mxu1 %v355_v4  ;;  %701 = vmatpush.msra.mxu3 %v355_v4  ;;  %v209_v11 = vld [vmem:[%s783_s8 + $0x58] sm:$0xff]  ;;  %v200_v12 = vld [vmem:[%s783_s8 + $0x10] sm:$0xff]  ;;  %v210_v13 = vld [vmem:[%s783_s8 + $0x60] sm:$0xff] }
  0x11   : > { %294 = vmatpush.msra.mxu0 %v219_v5  ;;  %697 = vmatpush.msra.mxu2 %v219_v5  ;;  %v201_v14 = vld [vmem:[%s783_s8 + $0x18] sm:$0xff]  ;;  %v211_v15 = vld [vmem:[%s783_s8 + $0x68] sm:$0xff]  ;;  %v202_v16 = vld [vmem:[%s783_s8 + $0x20] sm:$0xff] }
  0x12   : > { %373 = vmatpush.msra.mxu1 %v354_v6  ;;  %702 = vmatpush.msra.mxu3 %v354_v6  ;;  %v212_v17 = vld [vmem:[%s783_s8 + $0x70] sm:$0xff]  ;;  %v203_v18 = vld [vmem:[%s783_s8 + $0x28] sm:$0xff]  ;;  %v213_v19 = vld [vmem:[%s783_s8 + $0x78] sm:$0xff] }
  0x13   : > { %674 = vmatmul.msk.f32.vlgmr.msra.gmra.mxu1 %vm222_vm0, %v198_v8  ;;  %684 = vmatmul.msk.f32.vlgmr.msra.gmra.mxu3 %vm222_vm0, %v208_v9  ;;  %v204_v20 = vld [vmem:[%s783_s8 + $0x30] sm:$0xff]  ;;  %v214_v21 = vld [vmem:[%s783_s8 + $0x80] sm:$0xff]  ;;  %v205_v22 = vld [vmem:[%s783_s8 + $0x38] sm:$0xff] }
  0x14   : > { %295 = vmatpush.msra.mxu0 %v218_v7  ;;  %698 = vmatpush.msra.mxu2 %v218_v7  ;;  %v215_v23 = vld [vmem:[%s783_s8 + $0x88] sm:$0xff]  ;;  %v206_v24 = vld [vmem:[%s783_s8 + $0x40] sm:$0xff]  ;;  %v216_v25 = vld [vmem:[%s783_s8 + $0x90] sm:$0xf] }
  0x15   : > { %655 = vmatmul.msk.f32.vlgmr.msra.gmra.mxu0 %vm222_vm0, %v198_v8  ;;  %665 = vmatmul.msk.f32.vlgmr.msra.gmra.mxu2 %vm222_vm0, %v208_v9  ;;  %v207_v26 = vld [vmem:[%s783_s8 + $0x48] sm:$0xff]  ;;  %v217_v28 = vld [vmem:[%s935_s3] sm:$0x1] }
  0x16   : > { %v851_v30 = vld [vmem:[%s935_s3] ss:$0 sm:$0xff] }
  0x1b   : > { %675 = vmatmul.msk.f32.gmra.mxu1 %vm222_vm0, %v199_v10  ;;  %685 = vmatmul.msk.f32.gmra.mxu3 %vm222_vm0, %v209_v11 }
  0x1d   : > { %656 = vmatmul.msk.f32.gmra.mxu0 %vm222_vm0, %v199_v10  ;;  %666 = vmatmul.msk.f32.gmra.mxu2 %vm222_vm0, %v209_v11 }
  0x23   : > { %676 = vmatmul.msk.f32.gmra.mxu1 %vm222_vm0, %v200_v12  ;;  %686 = vmatmul.msk.f32.gmra.mxu3 %vm222_vm0, %v210_v13 }
  0x25   : > { %657 = vmatmul.msk.f32.gmra.mxu0 %vm222_vm0, %v200_v12  ;;  %667 = vmatmul.msk.f32.gmra.mxu2 %vm222_vm0, %v210_v13 }
  0x2b   : > { %677 = vmatmul.msk.f32.gmra.mxu1 %vm222_vm0, %v201_v14  ;;  %687 = vmatmul.msk.f32.gmra.mxu3 %vm222_vm0, %v211_v15 }
  0x2d   : > { %658 = vmatmul.msk.f32.gmra.mxu0 %vm222_vm0, %v201_v14  ;;  %668 = vmatmul.msk.f32.gmra.mxu2 %vm222_vm0, %v211_v15 }
  0x33   : > { %678 = vmatmul.msk.f32.gmra.mxu1 %vm222_vm0, %v202_v16  ;;  %688 = vmatmul.msk.f32.gmra.mxu3 %vm222_vm0, %v212_v17 }
  0x35   : > { %659 = vmatmul.msk.f32.gmra.mxu0 %vm222_vm0, %v202_v16  ;;  %669 = vmatmul.msk.f32.gmra.mxu2 %vm222_vm0, %v212_v17 }
  0x3b   : > { %679 = vmatmul.msk.f32.gmra.mxu1 %vm222_vm0, %v203_v18  ;;  %689 = vmatmul.msk.f32.gmra.mxu3 %vm222_vm0, %v213_v19 }
  0x3d   : > { %660 = vmatmul.msk.f32.gmra.mxu0 %vm222_vm0, %v203_v18  ;;  %670 = vmatmul.msk.f32.gmra.mxu2 %vm222_vm0, %v213_v19 }
  0x43   : > { %680 = vmatmul.msk.f32.gmra.mxu1 %vm222_vm0, %v204_v20  ;;  %690 = vmatmul.msk.f32.gmra.mxu3 %vm222_vm0, %v214_v21 }
  0x45   : > { %661 = vmatmul.msk.f32.gmra.mxu0 %vm222_vm0, %v204_v20  ;;  %671 = vmatmul.msk.f32.gmra.mxu2 %vm222_vm0, %v214_v21 }
  0x4b   : > { %681 = vmatmul.msk.f32.gmra.mxu1 %vm222_vm0, %v205_v22  ;;  %691 = vmatmul.msk.f32.gmra.mxu3 %vm222_vm0, %v215_v23 }
  0x4d   : > { %662 = vmatmul.msk.f32.gmra.mxu0 %vm222_vm0, %v205_v22  ;;  %672 = vmatmul.msk.f32.gmra.mxu2 %vm222_vm0, %v215_v23 }
  0x53   : > { %682 = vmatmul.msk.f32.gmra.mxu1 %vm222_vm0, %v206_v24  ;;  %692 = vmatmul.msk.f32.gmra.mxu3 %vm222_vm0, %v216_v25 }
  0x55   : > { %663 = vmatmul.msk.f32.gmra.mxu0 %vm222_vm0, %v206_v24  ;;  %673 = vmatmul.msk.f32.gmra.mxu2 %vm222_vm0, %v216_v25 }
  0x5b   : > { %683 = vmatmul.msk.f32.gmra.mxu1 %vm222_vm0, %v207_v26 }
  0x5d   : > { %664 = vmatmul.msk.f32.gmra.mxu0 %vm222_vm0, %v207_v26 }
  0x90   : > { %v375_v27 = vpop.f32.mrf.mxu1 }
  0x91   : > { %v455_v29 = vrot.slane %v375_v27, 7 }
  0x92   : > { %v297_v31 = vpop.f32.mrf.mxu0 }
  0x93   : > { %v432_v32 = vadd.f32 %v297_v31, %v217_v28  ;;  %v511_v33 = vadd.f32 %v455_v29, %v297_v31 }
  0x95   : > { %v433_v34 = vmax.f32 %v432_v32, 0.0  ;;  %v533_v35 = vadd.f32 %v851_v30, %v511_v33 }
  0x96   : > { %v861_v36 = vpop.f32.mrf.mxu3 }
  0x97   : > { %434 = vst [vmem:[%s858_s19] sm:$0x1] %v433_v34  ;;  %v552_v37 = vmax.f32 %v533_v35, 0.0  ;;  %v474_v46 = vrot.slane %v861_v36, 7 }
  0x98   : > { %v378_v38 = vpop.f32.mrf.mxu1  ;;  %v864_v39 = vpop.f32.mrf.mxu2 }
  0x99   : > { %571 = vst [vmem:[%s858_s19] sm:$0xfe] %v552_v37  ;;  %v456_v40 = vrot.slane %v378_v38, 7 }
  0x9a   : > { %v300_v41 = vpop.f32.mrf.mxu0 }
  0x9b   : > { %v457_v42 = vsel %vm454_vm1, %v455_v29, %v456_v40 }
  0x9c   : > { %v512_v43 = vadd.f32 %v457_v42, %v300_v41 }
  0x9e   : > { %v534_v44 = vadd.f32 %v851_v30, %v512_v43  ;;  %v408_v45 = vpop.f32.mrf.mxu3 }
  0x9f   : > { %v476_v47 = vrot.slane %v408_v45, 7 }
  0xa0   : > { %v553_v48 = vmax.f32 %v534_v44, 0.0  ;;  %v381_v49 = vpop.f32.mrf.mxu1  ;;  %v330_v50 = vpop.f32.mrf.mxu2 }
  0xa1   : > { %v458_v51 = vrot.slane %v381_v49, 7  ;;  %v477_v52 = vsel %vm454_vm1, %v474_v46, %v476_v47 }
  0xa2   : > { %572 = vst [vmem:[%s858_s19 + $0x8] sm:$0xff] %v553_v48  ;;  %v522_v53 = vadd.f32 %v477_v52, %v330_v50  ;;  %v303_v54 = vpop.f32.mrf.mxu0 }
  0xa3   : > { %v459_v55 = vsel %vm454_vm1, %v456_v40, %v458_v51 }
  0xa4   : > { %v544_v56 = vadd.f32 %v851_v30, %v522_v53  ;;  %v513_v57 = vadd.f32 %v459_v55, %v303_v54 }
  0xa6   : > { %v563_v58 = vmax.f32 %v544_v56, 0.0  ;;  %v535_v59 = vadd.f32 %v851_v30, %v513_v57  ;;  %v411_v60 = vpop.f32.mrf.mxu3 }
  0xa7   : > { %v478_v61 = vrot.slane %v411_v60, 7 }
  0xa8   : > { %582 = vst [vmem:[%s858_s19 + $0x58] sm:$0xff] %v563_v58  ;;  %v554_v62 = vmax.f32 %v535_v59, 0.0  ;;  %v384_v63 = vpop.f32.mrf.mxu1  ;;  %v333_v0 = vpop.f32.mrf.mxu2 }
  0xa9   : > { %v460_v1 = vrot.slane %v384_v63, 7  ;;  %v479_v2 = vsel %vm454_vm1, %v476_v47, %v478_v61 }
  0xaa   : > { %573 = vst [vmem:[%s858_s19 + $0x10] sm:$0xff] %v554_v62  ;;  %v523_v3 = vadd.f32 %v479_v2, %v333_v0  ;;  %v306_v4 = vpop.f32.mrf.mxu0 }
  0xab   : > { %v461_v5 = vsel %vm454_vm1, %v458_v51, %v460_v1 }
  0xac   : > { %v545_v6 = vadd.f32 %v851_v30, %v523_v3  ;;  %v514_v7 = vadd.f32 %v461_v5, %v306_v4 }
  0xae   : > { %v564_v8 = vmax.f32 %v545_v6, 0.0  ;;  %v536_v9 = vadd.f32 %v851_v30, %v514_v7  ;;  %v414_v10 = vpop.f32.mrf.mxu3 }
  0xaf   : > { %v480_v11 = vrot.slane %v414_v10, 7 }
  0xb0   : > { %583 = vst [vmem:[%s858_s19 + $0x60] sm:$0xff] %v564_v8  ;;  %v555_v12 = vmax.f32 %v536_v9, 0.0  ;;  %v387_v13 = vpop.f32.mrf.mxu1  ;;  %v336_v14 = vpop.f32.mrf.mxu2 }
  0xb1   : > { %v462_v15 = vrot.slane %v387_v13, 7  ;;  %v481_v16 = vsel %vm454_vm1, %v478_v61, %v480_v11 }
  0xb2   : > { %574 = vst [vmem:[%s858_s19 + $0x18] sm:$0xff] %v555_v12  ;;  %v524_v17 = vadd.f32 %v481_v16, %v336_v14  ;;  %v309_v18 = vpop.f32.mrf.mxu0 }
  0xb3   : > { %v463_v19 = vsel %vm454_vm1, %v460_v1, %v462_v15 }
  0xb4   : > { %v546_v20 = vadd.f32 %v851_v30, %v524_v17  ;;  %v515_v21 = vadd.f32 %v463_v19, %v309_v18 }
  0xb6   : > { %v565_v22 = vmax.f32 %v546_v20, 0.0  ;;  %v537_v23 = vadd.f32 %v851_v30, %v515_v21  ;;  %v417_v24 = vpop.f32.mrf.mxu3 }
  0xb7   : > { %v482_v25 = vrot.slane %v417_v24, 7 }
  0xb8   : > { %584 = vst [vmem:[%s858_s19 + $0x68] sm:$0xff] %v565_v22  ;;  %v556_v26 = vmax.f32 %v537_v23, 0.0  ;;  %v390_v27 = vpop.f32.mrf.mxu1  ;;  %v339_v28 = vpop.f32.mrf.mxu2 }
  0xb9   : > { %v464_v29 = vrot.slane %v390_v27, 7  ;;  %v483_v31 = vsel %vm454_vm1, %v480_v11, %v482_v25 }
  0xba   : > { %575 = vst [vmem:[%s858_s19 + $0x20] sm:$0xff] %v556_v26  ;;  %v525_v32 = vadd.f32 %v483_v31, %v339_v28  ;;  %v312_v33 = vpop.f32.mrf.mxu0 }
  0xbb   : > { %v465_v34 = vsel %vm454_vm1, %v462_v15, %v464_v29 }
  0xbc   : > { %v547_v35 = vadd.f32 %v851_v30, %v525_v32  ;;  %v516_v37 = vadd.f32 %v465_v34, %v312_v33 }
  0xbe   : > { %v566_v38 = vmax.f32 %v547_v35, 0.0  ;;  %v538_v40 = vadd.f32 %v851_v30, %v516_v37  ;;  %v420_v41 = vpop.f32.mrf.mxu3 }
  0xbf   : > { %v484_v42 = vrot.slane %v420_v41, 7 }
  0xc0   : > { %585 = vst [vmem:[%s858_s19 + $0x70] sm:$0xff] %v566_v38  ;;  %v557_v43 = vmax.f32 %v538_v40, 0.0  ;;  %v393_v44 = vpop.f32.mrf.mxu1  ;;  %v342_v45 = vpop.f32.mrf.mxu2 }
  0xc1   : > { %v466_v47 = vrot.slane %v393_v44, 7  ;;  %v485_v48 = vsel %vm454_vm1, %v482_v25, %v484_v42 }
  0xc2   : > { %576 = vst [vmem:[%s858_s19 + $0x28] sm:$0xff] %v557_v43  ;;  %v526_v49 = vadd.f32 %v485_v48, %v342_v45  ;;  %v315_v50 = vpop.f32.mrf.mxu0 }
  0xc3   : > { %v467_v51 = vsel %vm454_vm1, %v464_v29, %v466_v47 }
  0xc4   : > { %v548_v52 = vadd.f32 %v851_v30, %v526_v49  ;;  %v517_v53 = vadd.f32 %v467_v51, %v315_v50 }
  0xc6   : > { %v567_v54 = vmax.f32 %v548_v52, 0.0  ;;  %v539_v55 = vadd.f32 %v851_v30, %v517_v53  ;;  %v423_v56 = vpop.f32.mrf.mxu3 }
  0xc7   : > { %v486_v57 = vrot.slane %v423_v56, 7 }
  0xc8   : > { %586 = vst [vmem:[%s858_s19 + $0x78] sm:$0xff] %v567_v54  ;;  %v558_v58 = vmax.f32 %v539_v55, 0.0  ;;  %v396_v59 = vpop.f32.mrf.mxu1  ;;  %v345_v60 = vpop.f32.mrf.mxu2 }
  0xc9   : > { %v468_v61 = vrot.slane %v396_v59, 7  ;;  %v487_v62 = vsel %vm454_vm1, %v484_v42, %v486_v57 }
  0xca   : > { %577 = vst [vmem:[%s858_s19 + $0x30] sm:$0xff] %v558_v58  ;;  %v527_v63 = vadd.f32 %v487_v62, %v345_v60  ;;  %v318_v0 = vpop.f32.mrf.mxu0 }
  0xcb   : > { %v469_v1 = vsel %vm454_vm1, %v466_v47, %v468_v61 }
  0xcc   : > { %v549_v2 = vadd.f32 %v851_v30, %v527_v63  ;;  %v518_v3 = vadd.f32 %v469_v1, %v318_v0 }
  0xce   : > { %v568_v4 = vmax.f32 %v549_v2, 0.0  ;;  %v540_v5 = vadd.f32 %v851_v30, %v518_v3  ;;  %v426_v6 = vpop.f32.mrf.mxu3 }
  0xcf   : > { %v488_v7 = vrot.slane %v426_v6, 7 }
  0xd0   : > { %587 = vst [vmem:[%s858_s19 + $0x80] sm:$0xff] %v568_v4  ;;  %v559_v8 = vmax.f32 %v540_v5, 0.0  ;;  %v399_v9 = vpop.f32.mrf.mxu1  ;;  %v348_v10 = vpop.f32.mrf.mxu2 }
  0xd1   : > { %v470_v11 = vrot.slane %v399_v9, 7  ;;  %v489_v12 = vsel %vm454_vm1, %v486_v57, %v488_v7 }
  0xd2   : > { %578 = vst [vmem:[%s858_s19 + $0x38] sm:$0xff] %v559_v8  ;;  %v528_v13 = vadd.f32 %v489_v12, %v348_v10  ;;  %v321_v14 = vpop.f32.mrf.mxu0 }
  0xd3   : > { %v471_v15 = vsel %vm454_vm1, %v468_v61, %v470_v11 }
  0xd4   : > { %v550_v16 = vadd.f32 %v851_v30, %v528_v13  ;;  %v519_v17 = vadd.f32 %v471_v15, %v321_v14 }
  0xd6   : > { %v569_v18 = vmax.f32 %v550_v16, 0.0  ;;  %v541_v19 = vadd.f32 %v851_v30, %v519_v17  ;;  %v429_v20 = vpop.f32.mrf.mxu3 }
  0xd7   : > { %v490_v21 = vrot.slane %v429_v20, 7  ;;  %v590_v22 = vadd.f32 %v851_v30, %v429_v20 }
  0xd8   : > { %588 = vst [vmem:[%s858_s19 + $0x88] sm:$0xff] %v569_v18  ;;  %v560_v23 = vmax.f32 %v541_v19, 0.0  ;;  %v402_v24 = vpop.f32.mrf.mxu1  ;;  %v351_v25 = vpop.f32.mrf.mxu2 }
  0xd9   : > { %v591_v26 = vmax.f32 %v590_v22, 0.0  ;;  %v472_v27 = vrot.slane %v402_v24, 7  ;;  %v491_v28 = vsel %vm454_vm1, %v488_v7, %v490_v21 }
  0xda   : > { %579 = vst [vmem:[%s858_s19 + $0x40] sm:$0xff] %v560_v23  ;;  %v529_v29 = vadd.f32 %v491_v28, %v351_v25  ;;  %v324_v31 = vpop.f32.mrf.mxu0 }
  0xdb   : > { %592 = vst [vmem:[%s858_s19 + $0x91] sm:$0x8] %v591_v26  ;;  %v475_v32 = vsel %vm454_vm1, %v472_v27, %v474_v46  ;;  %v473_v33 = vsel %vm454_vm1, %v470_v11, %v472_v27 }
  0xdc   : > { %v521_v34 = vadd.f32 %v475_v32, %v864_v39  ;;  %v551_v35 = vadd.f32 %v851_v30, %v529_v29  ;;  %v520_v37 = vadd.f32 %v473_v33, %v324_v31 }
  0xde   : > { %v543_v38 = vadd.f32 %v851_v30, %v521_v34  ;;  %v570_v40 = vmax.f32 %v551_v35, 0.0  ;;  %v542_v41 = vadd.f32 %v851_v30, %v520_v37 }
  0xe0   : > { %v562_v42 = vmax.f32 %v543_v38, 0.0  ;;  %589 = vst [vmem:[%s858_s19 + $0x90] sm:$0xf] %v570_v40  ;;  %v561_v43 = vmax.f32 %v542_v41, 0.0 }
  0xe2   : > { %581 = vst [vmem:[%s858_s19 + $0x50] sm:$0xff] %v562_v42 }
  0xe3   : > { %580 = vst [vmem:[%s858_s19 + $0x48] sm:$0xff] %v561_v43 }
  0xe4 PF: > { %s14_s15 = sadd.s32 1, %s719_s15  }
  0xe5   : > { %p11_p4 = scmp.ge.s32.totalorder %s14_s15, 4  }
  0xe7   :  { %13 = sbr.rel (!%p11_p4) target bundleno = 1 (0x1), region = 66 }

// kernel: sentence_embedding_heads.7
= control target key start
LH: loop header
LB: loop body
LE: loop exit
PB: predicated region body
PF: predicated region fallthrough
CT: control target
= control target key end

     0   :  { %s1867_s15 = smov 0   ;;  %s2394_s0 = inlined_call_operand.vmem [shape: f32[2,596,32], index: 0, kind: input, shape index: {}]   ;;  %s2395_s1 = inlined_call_operand.vmem [shape: f32[32,128], index: 1, kind: input, shape index: {}]   ;;  %s2396_s2 = inlined_call_operand.vmem [shape: f32[32,128], index: 2, kind: input, shape index: {}]   ;;  %s2397_s3 = inlined_call_operand.vmem [shape: f32[1,128], index: 3, kind: input, shape index: {}]   ;;  %s2398_s4 = inlined_call_operand.vmem [shape: f32[2,597,128], index: 4, kind: output, shape index: {}]  }
   0x1 LB: > { %s1656_s16 = sadd.s32 4294967295, %s1840_s15   ;;  %p1660_p0 = scmp.ge.s32.totalorder %s1840_s15, 1  ;;  %s1840_s15 = sphi %s1867_s15, %s14_s15  }
   0x2   : > { %p162_p1 = scmp.lt.s32.totalorder %s1840_s15, 3 }
   0x4   : > { %p163_p2 = pnand %p1660_p0, %p162_p1 }
   0x5   : > { %p188_p3 = scmp.lt.s32.totalorder (!%p163_p2), %s1656_s16, 1 }
   0x6   : > { %166 = sbr.rel (%p163_p2) target bundleno = 452 (0x1c4), region = 36 }
   0xb   : > { %v749_v0 = vld [vmem:[%s2396_s2 + $0x18] sm:$0xff]  ;;  %v748_v2 = vld [vmem:[%s2396_s2 + $0x10] sm:$0xff]  ;;  %v747_v4 = vld [vmem:[%s2396_s2 + $0x8] sm:$0xff]  ;;  %s2400_s16 = smov (!%p188_p3, %s1656_s16), 1  ;;  %vm278_vm0 = vcmask 261120   ;;  %vm1070_vm1 = vcmask 1040384  }
   0xc   : > { %v277_v1 = vld [vmem:[%s2395_s1 + $0x18] sm:$0xff]  ;;  %762 = vmatpush.msra.mxu1 %v749_v0  ;;  %1819 = vmatpush.msra.mxu3 %v749_v0  ;;  %v276_v3 = vld [vmem:[%s2395_s1 + $0x10] sm:$0xff]  ;;  %v275_v5 = vld [vmem:[%s2395_s1 + $0x8] sm:$0xff]  ;;  %s1823_s5 = smul.u32 600, %s2400_s16 }
   0xd   : > { %516 = vmatpush.msra.mxu0 %v277_v1  ;;  %1815 = vmatpush.msra.mxu2 %v277_v1  ;;  %v746_v6 = vld [vmem:[%s2396_s2] sm:$0xff] }
   0xe   : > { %763 = vmatpush.msra.mxu1 %v748_v2  ;;  %1820 = vmatpush.msra.mxu3 %v748_v2  ;;  %s1904_s8 = scalar_lea.vmem %s2394_s0, %s1823_s5  ;;  %v274_v7 = vld [vmem:[%s2395_s1] sm:$0xff]  ;;  %s2022_s19 = scalar_lea.vmem %s2398_s4, %s1823_s5 }
   0xf   : > { %517 = vmatpush.msra.mxu0 %v276_v3  ;;  %1816 = vmatpush.msra.mxu2 %v276_v3  ;;  %v198_v8 = vld [vmem:[%s1904_s8] sm:$0xff]  ;;  %v236_v9 = vld [vmem:[%s1904_s8 + $0x130] sm:$0xff]  ;;  %v199_v10 = vld [vmem:[%s1904_s8 + $0x8] sm:$0xff] }
  0x10   : > { %764 = vmatpush.msra.mxu1 %v747_v4  ;;  %1821 = vmatpush.msra.mxu3 %v747_v4  ;;  %v237_v11 = vld [vmem:[%s1904_s8 + $0x138] sm:$0xff]  ;;  %v200_v12 = vld [vmem:[%s1904_s8 + $0x10] sm:$0xff]  ;;  %v238_v13 = vld [vmem:[%s1904_s8 + $0x140] sm:$0xff] }
  0x11   : > { %518 = vmatpush.msra.mxu0 %v275_v5  ;;  %1817 = vmatpush.msra.mxu2 %v275_v5  ;;  %v201_v14 = vld [vmem:[%s1904_s8 + $0x18] sm:$0xff]  ;;  %v239_v15 = vld [vmem:[%s1904_s8 + $0x148] sm:$0xff]  ;;  %v202_v16 = vld [vmem:[%s1904_s8 + $0x20] sm:$0xff] }
  0x12   : > { %765 = vmatpush.msra.mxu1 %v746_v6  ;;  %1822 = vmatpush.msra.mxu3 %v746_v6  ;;  %v240_v17 = vld [vmem:[%s1904_s8 + $0x150] sm:$0xff]  ;;  %v203_v18 = vld [vmem:[%s1904_s8 + $0x28] sm:$0xff]  ;;  %v241_v19 = vld [vmem:[%s1904_s8 + $0x158] sm:$0xff] }
  0x13   : > { %1738 = vmatmul.msk.f32.vlgmr.msra.gmra.mxu1 %vm278_vm0, %v198_v8  ;;  %1776 = vmatmul.msk.f32.vlgmr.msra.gmra.mxu3 %vm278_vm0, %v236_v9  ;;  %v204_v20 = vld [vmem:[%s1904_s8 + $0x30] sm:$0xff]  ;;  %v242_v21 = vld [vmem:[%s1904_s8 + $0x160] sm:$0xff]  ;;  %v205_v22 = vld [vmem:[%s1904_s8 + $0x38] sm:$0xff] }
  0x14   : > { %519 = vmatpush.msra.mxu0 %v274_v7  ;;  %1818 = vmatpush.msra.mxu2 %v274_v7  ;;  %v243_v23 = vld [vmem:[%s1904_s8 + $0x168] sm:$0xff]  ;;  %v206_v24 = vld [vmem:[%s1904_s8 + $0x40] sm:$0xff]  ;;  %v244_v25 = vld [vmem:[%s1904_s8 + $0x170] sm:$0xff] }
  0x15   : > { %1663 = vmatmul.msk.f32.vlgmr.msra.gmra.mxu0 %vm278_vm0, %v198_v8  ;;  %1701 = vmatmul.msk.f32.vlgmr.msra.gmra.mxu2 %vm278_vm0, %v236_v9  ;;  %v207_v26 = vld [vmem:[%s1904_s8 + $0x48] sm:$0xff]  ;;  %v245_v27 = vld [vmem:[%s1904_s8 + $0x178] sm:$0xff]  ;;  %v208_v28 = vld [vmem:[%s1904_s8 + $0x50] sm:$0xff] }
  0x16   : > { %v246_v29 = vld [vmem:[%s1904_s8 + $0x180] sm:$0xff]  ;;  %v209_v30 = vld [vmem:[%s1904_s8 + $0x58] sm:$0xff]  ;;  %v247_v31 = vld [vmem:[%s1904_s8 + $0x188] sm:$0xff] }
  0x17   : > { %v210_v32 = vld [vmem:[%s1904_s8 + $0x60] sm:$0xff]  ;;  %v248_v33 = vld [vmem:[%s1904_s8 + $0x190] sm:$0xff]  ;;  %v211_v34 = vld [vmem:[%s1904_s8 + $0x68] sm:$0xff] }
  0x18   : > { %v249_v35 = vld [vmem:[%s1904_s8 + $0x198] sm:$0xff]  ;;  %v212_v36 = vld [vmem:[%s1904_s8 + $0x70] sm:$0xff]  ;;  %v250_v37 = vld [vmem:[%s1904_s8 + $0x1a0] sm:$0xff] }
  0x19   : > { %v213_v38 = vld [vmem:[%s1904_s8 + $0x78] sm:$0xff]  ;;  %v251_v39 = vld [vmem:[%s1904_s8 + $0x1a8] sm:$0xff]  ;;  %v273_v41 = vld [vmem:[%s2397_s3] sm:$0x1] }
  0x1a   : > { %v214_v42 = vld [vmem:[%s1904_s8 + $0x80] sm:$0xff]  ;;  %v252_v43 = vld [vmem:[%s1904_s8 + $0x1b0] sm:$0xff]  ;;  %v215_v55 = vld [vmem:[%s1904_s8 + $0x88] sm:$0xff] }
  0x1b   : > { %1739 = vmatmul.msk.f32.gmra.mxu1 %vm278_vm0, %v199_v10  ;;  %1777 = vmatmul.msk.f32.gmra.mxu3 %vm278_vm0, %v237_v11  ;;  %v2013_v45 = vld [vmem:[%s2397_s3] ss:$0 sm:$0xff]  ;;  %v253_v56 = vld [vmem:[%s1904_s8 + $0x1b8] sm:$0xff]  ;;  %v216_v4 = vld [vmem:[%s1904_s8 + $0x90] sm:$0xff] }
  0x1c   : > { %v254_v5 = vld [vmem:[%s1904_s8 + $0x1c0] sm:$0xff] }
  0x1d   : > { %1664 = vmatmul.msk.f32.gmra.mxu0 %vm278_vm0, %v199_v10  ;;  %1702 = vmatmul.msk.f32.gmra.mxu2 %vm278_vm0, %v237_v11 }
  0x23   : > { %1740 = vmatmul.msk.f32.gmra.mxu1 %vm278_vm0, %v200_v12  ;;  %1778 = vmatmul.msk.f32.gmra.mxu3 %vm278_vm0, %v238_v13 }
  0x25   : > { %1665 = vmatmul.msk.f32.gmra.mxu0 %vm278_vm0, %v200_v12  ;;  %1703 = vmatmul.msk.f32.gmra.mxu2 %vm278_vm0, %v238_v13 }
  0x2b   : > { %1741 = vmatmul.msk.f32.gmra.mxu1 %vm278_vm0, %v201_v14  ;;  %1779 = vmatmul.msk.f32.gmra.mxu3 %vm278_vm0, %v239_v15 }
  0x2d   : > { %1666 = vmatmul.msk.f32.gmra.mxu0 %vm278_vm0, %v201_v14  ;;  %1704 = vmatmul.msk.f32.gmra.mxu2 %vm278_vm0, %v239_v15 }
  0x33   : > { %1742 = vmatmul.msk.f32.gmra.mxu1 %vm278_vm0, %v202_v16  ;;  %1780 = vmatmul.msk.f32.gmra.mxu3 %vm278_vm0, %v240_v17 }
  0x35   : > { %1667 = vmatmul.msk.f32.gmra.mxu0 %vm278_vm0, %v202_v16  ;;  %1705 = vmatmul.msk.f32.gmra.mxu2 %vm278_vm0, %v240_v17 }
  0x3b   : > { %1743 = vmatmul.msk.f32.gmra.mxu1 %vm278_vm0, %v203_v18  ;;  %1781 = vmatmul.msk.f32.gmra.mxu3 %vm278_vm0, %v241_v19 }
  0x3d   : > { %1668 = vmatmul.msk.f32.gmra.mxu0 %vm278_vm0, %v203_v18  ;;  %1706 = vmatmul.msk.f32.gmra.mxu2 %vm278_vm0, %v241_v19 }
  0x43   : > { %1744 = vmatmul.msk.f32.gmra.mxu1 %vm278_vm0, %v204_v20  ;;  %1782 = vmatmul.msk.f32.gmra.mxu3 %vm278_vm0, %v242_v21 }
  0x45   : > { %1669 = vmatmul.msk.f32.gmra.mxu0 %vm278_vm0, %v204_v20  ;;  %1707 = vmatmul.msk.f32.gmra.mxu2 %vm278_vm0, %v242_v21  ;;  %v217_v20 = vld [vmem:[%s1904_s8 + $0x98] sm:$0xff]  ;;  %v255_v21 = vld [vmem:[%s1904_s8 + $0x1c8] sm:$0xff] }
  0x4b   : > { %1745 = vmatmul.msk.f32.gmra.mxu1 %vm278_vm0, %v205_v22  ;;  %1783 = vmatmul.msk.f32.gmra.mxu3 %vm278_vm0, %v243_v23 }
  0x4d   : > { %1670 = vmatmul.msk.f32.gmra.mxu0 %vm278_vm0, %v205_v22  ;;  %1708 = vmatmul.msk.f32.gmra.mxu2 %vm278_vm0, %v243_v23 }
  0x53   : > { %1746 = vmatmul.msk.f32.gmra.mxu1 %vm278_vm0, %v206_v24  ;;  %1784 = vmatmul.msk.f32.gmra.mxu3 %vm278_vm0, %v244_v25 }
  0x55   : > { %1671 = vmatmul.msk.f32.gmra.mxu0 %vm278_vm0, %v206_v24  ;;  %1709 = vmatmul.msk.f32.gmra.mxu2 %vm278_vm0, %v244_v25 }
  0x5b   : > { %1747 = vmatmul.msk.f32.gmra.mxu1 %vm278_vm0, %v207_v26  ;;  %1785 = vmatmul.msk.f32.gmra.mxu3 %vm278_vm0, %v245_v27 }
  0x5d   : > { %1672 = vmatmul.msk.f32.gmra.mxu0 %vm278_vm0, %v207_v26  ;;  %1710 = vmatmul.msk.f32.gmra.mxu2 %vm278_vm0, %v245_v27 }
  0x63   : > { %1748 = vmatmul.msk.f32.gmra.mxu1 %vm278_vm0, %v208_v28  ;;  %1786 = vmatmul.msk.f32.gmra.mxu3 %vm278_vm0, %v246_v29 }
  0x65   : > { %1673 = vmatmul.msk.f32.gmra.mxu0 %vm278_vm0, %v208_v28  ;;  %1711 = vmatmul.msk.f32.gmra.mxu2 %vm278_vm0, %v246_v29 }
  0x6b   : > { %1749 = vmatmul.msk.f32.gmra.mxu1 %vm278_vm0, %v209_v30  ;;  %1787 = vmatmul.msk.f32.gmra.mxu3 %vm278_vm0, %v247_v31 }
  0x6d   : > { %1674 = vmatmul.msk.f32.gmra.mxu0 %vm278_vm0, %v209_v30  ;;  %1712 = vmatmul.msk.f32.gmra.mxu2 %vm278_vm0, %v247_v31 }
  0x73   : > { %1750 = vmatmul.msk.f32.gmra.mxu1 %vm278_vm0, %v210_v32  ;;  %1788 = vmatmul.msk.f32.gmra.mxu3 %vm278_vm0, %v248_v33 }
  0x75   : > { %1675 = vmatmul.msk.f32.gmra.mxu0 %vm278_vm0, %v210_v32  ;;  %1713 = vmatmul.msk.f32.gmra.mxu2 %vm278_vm0, %v248_v33 }
  0x7b   : > { %1751 = vmatmul.msk.f32.gmra.mxu1 %vm278_vm0, %v211_v34  ;;  %1789 = vmatmul.msk.f32.gmra.mxu3 %vm278_vm0, %v249_v35 }
  0x7d   : > { %1676 = vmatmul.msk.f32.gmra.mxu0 %vm278_vm0, %v211_v34  ;;  %1714 = vmatmul.msk.f32.gmra.mxu2 %vm278_vm0, %v249_v35 }
  0x83   : > { %1752 = vmatmul.msk.f32.gmra.mxu1 %vm278_vm0, %v212_v36  ;;  %1790 = vmatmul.msk.f32.gmra.mxu3 %vm278_vm0, %v250_v37 }
  0x85   : > { %1677 = vmatmul.msk.f32.gmra.mxu0 %vm278_vm0, %v212_v36  ;;  %1715 = vmatmul.msk.f32.gmra.mxu2 %vm278_vm0, %v250_v37  ;;  %v218_v36 = vld [vmem:[%s1904_s8 + $0xa0] sm:$0xff]  ;;  %v256_v37 = vld [vmem:[%s1904_s8 + $0x1d0] sm:$0xff] }
  0x8b   : > { %1753 = vmatmul.msk.f32.gmra.mxu1 %vm278_vm0, %v213_v38  ;;  %1791 = vmatmul.msk.f32.gmra.mxu3 %vm278_vm0, %v251_v39 }
  0x8d   : > { %1678 = vmatmul.msk.f32.gmra.mxu0 %vm278_vm0, %v213_v38  ;;  %1716 = vmatmul.msk.f32.gmra.mxu2 %vm278_vm0, %v251_v39 }
  0x90   : > { %v767_v40 = vpop.f32.mrf.mxu1 }
  0x91   : > { %v1071_v44 = vrot.slane %v767_v40, 7 }
  0x92   : > { %v521_v46 = vpop.f32.mrf.mxu0 }
  0x93   : > { %v992_v47 = vadd.f32 %v521_v46, %v273_v41  ;;  %v1295_v48 = vadd.f32 %v1071_v44, %v521_v46  ;;  %1754 = vmatmul.msk.f32.gmra.mxu1 %vm278_vm0, %v214_v42  ;;  %1792 = vmatmul.msk.f32.gmra.mxu3 %vm278_vm0, %v252_v43 }
  0x95   : > { %v993_v49 = vmax.f32 %v992_v47, 0.0  ;;  %v1373_v50 = vadd.f32 %v2013_v45, %v1295_v48  ;;  %1679 = vmatmul.msk.f32.gmra.mxu0 %vm278_vm0, %v214_v42  ;;  %1717 = vmatmul.msk.f32.gmra.mxu2 %vm278_vm0, %v252_v43 }
  0x96   : > { %v2027_v51 = vpop.f32.mrf.mxu3 }
  0x97   : > { %994 = vst [vmem:[%s2022_s19] sm:$0x1] %v993_v49  ;;  %v1448_v52 = vmax.f32 %v1373_v50, 0.0  ;;  %v1146_v63 = vrot.slane %v2027_v51, 7 }
  0x98   : > { %v770_v53 = vpop.f32.mrf.mxu1  ;;  %v2030_v54 = vpop.f32.mrf.mxu2 }
  0x99   : > { %1523 = vst [vmem:[%s2022_s19] sm:$0xfe] %v1448_v52  ;;  %v1072_v57 = vrot.slane %v770_v53, 7 }
  0x9a   : > { %v524_v58 = vpop.f32.mrf.mxu0 }
  0x9b   : > { %v1073_v59 = vsel %vm1070_vm1, %v1071_v44, %v1072_v57  ;;  %1755 = vmatmul.msk.f32.gmra.mxu1 %vm278_vm0, %v215_v55  ;;  %1793 = vmatmul.msk.f32.gmra.mxu3 %vm278_vm0, %v253_v56 }
  0x9c   : > { %v1296_v60 = vadd.f32 %v1073_v59, %v524_v58 }
  0x9d   : > { %1680 = vmatmul.msk.f32.gmra.mxu0 %vm278_vm0, %v215_v55  ;;  %1718 = vmatmul.msk.f32.gmra.mxu2 %vm278_vm0, %v253_v56  ;;  %v219_v55 = vld [vmem:[%s1904_s8 + $0xa8] sm:$0xff]  ;;  %v257_v56 = vld [vmem:[%s1904_s8 + $0x1d8] sm:$0xff] }
  0x9e   : > { %v1374_v61 = vadd.f32 %v2013_v45, %v1296_v60  ;;  %v884_v62 = vpop.f32.mrf.mxu3 }
  0x9f   : > { %v1148_v0 = vrot.slane %v884_v62, 7 }
  0xa0   : > { %v1449_v1 = vmax.f32 %v1374_v61, 0.0  ;;  %v773_v2 = vpop.f32.mrf.mxu1  ;;  %v638_v3 = vpop.f32.mrf.mxu2 }
  0xa1   : > { %v1074_v6 = vrot.slane %v773_v2, 7  ;;  %v1149_v7 = vsel %vm1070_vm1, %v1146_v63, %v1148_v0 }
  0xa2   : > { %1524 = vst [vmem:[%s2022_s19 + $0x8] sm:$0xff] %v1449_v1  ;;  %v1334_v8 = vadd.f32 %v1149_v7, %v638_v3  ;;  %v527_v9 = vpop.f32.mrf.mxu0 }
  0xa3   : > { %v1075_v10 = vsel %vm1070_vm1, %v1072_v57, %v1074_v6  ;;  %1756 = vmatmul.msk.f32.gmra.mxu1 %vm278_vm0, %v216_v4  ;;  %1794 = vmatmul.msk.f32.gmra.mxu3 %vm278_vm0, %v254_v5 }
  0xa4   : > { %v1412_v11 = vadd.f32 %v2013_v45, %v1334_v8  ;;  %v1297_v12 = vadd.f32 %v1075_v10, %v527_v9  ;;  %v220_v8 = vld [vmem:[%s1904_s8 + $0xb0] sm:$0xff]  ;;  %v258_v9 = vld [vmem:[%s1904_s8 + $0x1e0] sm:$0xff] }
  0xa5   : > { %1681 = vmatmul.msk.f32.gmra.mxu0 %vm278_vm0, %v216_v4  ;;  %1719 = vmatmul.msk.f32.gmra.mxu2 %vm278_vm0, %v254_v5 }
  0xa6   : > { %v1487_v13 = vmax.f32 %v1412_v11, 0.0  ;;  %v1375_v14 = vadd.f32 %v2013_v45, %v1297_v12  ;;  %v887_v15 = vpop.f32.mrf.mxu3 }
  0xa7   : > { %v1150_v16 = vrot.slane %v887_v15, 7 }
  0xa8   : > { %1562 = vst [vmem:[%s2022_s19 + $0x138] sm:$0xff] %v1487_v13  ;;  %v1450_v17 = vmax.f32 %v1375_v14, 0.0  ;;  %v776_v18 = vpop.f32.mrf.mxu1  ;;  %v641_v19 = vpop.f32.mrf.mxu2 }
  0xa9   : > { %v1076_v22 = vrot.slane %v776_v18, 7  ;;  %v1151_v23 = vsel %vm1070_vm1, %v1148_v0, %v1150_v16 }
  0xaa   : > { %1525 = vst [vmem:[%s2022_s19 + $0x10] sm:$0xff] %v1450_v17  ;;  %v1335_v24 = vadd.f32 %v1151_v23, %v641_v19  ;;  %v530_v25 = vpop.f32.mrf.mxu0 }
  0xab   : > { %v1077_v26 = vsel %vm1070_vm1, %v1074_v6, %v1076_v22  ;;  %1757 = vmatmul.msk.f32.gmra.mxu1 %vm278_vm0, %v217_v20  ;;  %1795 = vmatmul.msk.f32.gmra.mxu3 %vm278_vm0, %v255_v21 }
  0xac   : > { %v1413_v27 = vadd.f32 %v2013_v45, %v1335_v24  ;;  %v1298_v28 = vadd.f32 %v1077_v26, %v530_v25  ;;  %v221_v24 = vld [vmem:[%s1904_s8 + $0xb8] sm:$0xff]  ;;  %v259_v25 = vld [vmem:[%s1904_s8 + $0x1e8] sm:$0xff] }
  0xad   : > { %1682 = vmatmul.msk.f32.gmra.mxu0 %vm278_vm0, %v217_v20  ;;  %1720 = vmatmul.msk.f32.gmra.mxu2 %vm278_vm0, %v255_v21 }
  0xae   : > { %v1488_v29 = vmax.f32 %v1413_v27, 0.0  ;;  %v1376_v30 = vadd.f32 %v2013_v45, %v1298_v28  ;;  %v890_v31 = vpop.f32.mrf.mxu3 }
  0xaf   : > { %v1152_v32 = vrot.slane %v890_v31, 7 }
  0xb0   : > { %1563 = vst [vmem:[%s2022_s19 + $0x140] sm:$0xff] %v1488_v29  ;;  %v1451_v33 = vmax.f32 %v1376_v30, 0.0  ;;  %v779_v34 = vpop.f32.mrf.mxu1  ;;  %v644_v35 = vpop.f32.mrf.mxu2 }
  0xb1   : > { %v1078_v38 = vrot.slane %v779_v34, 7  ;;  %v1153_v39 = vsel %vm1070_vm1, %v1150_v16, %v1152_v32 }
  0xb2   : > { %1526 = vst [vmem:[%s2022_s19 + $0x18] sm:$0xff] %v1451_v33  ;;  %v1336_v40 = vadd.f32 %v1153_v39, %v644_v35  ;;  %v533_v41 = vpop.f32.mrf.mxu0 }
  0xb3   : > { %v1079_v42 = vsel %vm1070_vm1, %v1076_v22, %v1078_v38  ;;  %1758 = vmatmul.msk.f32.gmra.mxu1 %vm278_vm0, %v218_v36  ;;  %1796 = vmatmul.msk.f32.gmra.mxu3 %vm278_vm0, %v256_v37 }
  0xb4   : > { %v1414_v43 = vadd.f32 %v2013_v45, %v1336_v40  ;;  %v1299_v44 = vadd.f32 %v1079_v42, %v533_v41  ;;  %v222_v40 = vld [vmem:[%s1904_s8 + $0xc0] sm:$0xff]  ;;  %v260_v41 = vld [vmem:[%s1904_s8 + $0x1f0] sm:$0xff] }
  0xb5   : > { %1683 = vmatmul.msk.f32.gmra.mxu0 %vm278_vm0, %v218_v36  ;;  %1721 = vmatmul.msk.f32.gmra.mxu2 %vm278_vm0, %v256_v37 }
  0xb6   : > { %v1489_v46 = vmax.f32 %v1414_v43, 0.0  ;;  %v1377_v47 = vadd.f32 %v2013_v45, %v1299_v44  ;;  %v893_v48 = vpop.f32.mrf.mxu3 }
  0xb7   : > { %v1154_v49 = vrot.slane %v893_v48, 7 }
  0xb8   : > { %1564 = vst [vmem:[%s2022_s19 + $0x148] sm:$0xff] %v1489_v46  ;;  %v1452_v50 = vmax.f32 %v1377_v47, 0.0  ;;  %v782_v52 = vpop.f32.mrf.mxu1  ;;  %v647_v53 = vpop.f32.mrf.mxu2 }
  0xb9   : > { %v1080_v57 = vrot.slane %v782_v52, 7  ;;  %v1155_v58 = vsel %vm1070_vm1, %v1152_v32, %v1154_v49 }
  0xba   : > { %1527 = vst [vmem:[%s2022_s19 + $0x20] sm:$0xff] %v1452_v50  ;;  %v1337_v59 = vadd.f32 %v1155_v58, %v647_v53  ;;  %v536_v60 = vpop.f32.mrf.mxu0 }
  0xbb   : > { %v1081_v61 = vsel %vm1070_vm1, %v1078_v38, %v1080_v57  ;;  %1759 = vmatmul.msk.f32.gmra.mxu1 %vm278_vm0, %v219_v55  ;;  %1797 = vmatmul.msk.f32.gmra.mxu3 %vm278_vm0, %v257_v56 }
  0xbc   : > { %v1415_v62 = vadd.f32 %v2013_v45, %v1337_v59  ;;  %v1300_v0 = vadd.f32 %v1081_v61, %v536_v60  ;;  %v223_v59 = vld [vmem:[%s1904_s8 + $0xc8] sm:$0xff]  ;;  %v261_v60 = vld [vmem:[%s1904_s8 + $0x1f8] sm:$0xff] }
  0xbd   : > { %1684 = vmatmul.msk.f32.gmra.mxu0 %vm278_vm0, %v219_v55  ;;  %1722 = vmatmul.msk.f32.gmra.mxu2 %vm278_vm0, %v257_v56 }
  0xbe   : > { %v1490_v1 = vmax.f32 %v1415_v62, 0.0  ;;  %v1378_v2 = vadd.f32 %v2013_v45, %v1300_v0  ;;  %v896_v3 = vpop.f32.mrf.mxu3 }
  0xbf   : > { %v1156_v4 = vrot.slane %v896_v3, 7 }
  0xc0   : > { %1565 = vst [vmem:[%s2022_s19 + $0x150] sm:$0xff] %v1490_v1  ;;  %v1453_v5 = vmax.f32 %v1378_v2, 0.0  ;;  %v785_v6 = vpop.f32.mrf.mxu1  ;;  %v650_v7 = vpop.f32.mrf.mxu2 }
  0xc1   : > { %v1082_v10 = vrot.slane %v785_v6, 7  ;;  %v1157_v11 = vsel %vm1070_vm1, %v1154_v49, %v1156_v4 }
  0xc2   : > { %1528 = vst [vmem:[%s2022_s19 + $0x28] sm:$0xff] %v1453_v5  ;;  %v1338_v12 = vadd.f32 %v1157_v11, %v650_v7  ;;  %v539_v13 = vpop.f32.mrf.mxu0 }
  0xc3   : > { %v1083_v14 = vsel %vm1070_vm1, %v1080_v57, %v1082_v10  ;;  %1760 = vmatmul.msk.f32.gmra.mxu1 %vm278_vm0, %v220_v8  ;;  %1798 = vmatmul.msk.f32.gmra.mxu3 %vm278_vm0, %v258_v9 }
  0xc4   : > { %v1416_v15 = vadd.f32 %v2013_v45, %v1338_v12  ;;  %v1301_v16 = vadd.f32 %v1083_v14, %v539_v13  ;;  %v224_v12 = vld [vmem:[%s1904_s8 + $0xd0] sm:$0xff]  ;;  %v262_v13 = vld [vmem:[%s1904_s8 + $0x200] sm:$0xff] }
  0xc5   : > { %1685 = vmatmul.msk.f32.gmra.mxu0 %vm278_vm0, %v220_v8  ;;  %1723 = vmatmul.msk.f32.gmra.mxu2 %vm278_vm0, %v258_v9 }
  0xc6   : > { %v1491_v17 = vmax.f32 %v1416_v15, 0.0  ;;  %v1379_v18 = vadd.f32 %v2013_v45, %v1301_v16  ;;  %v899_v19 = vpop.f32.mrf.mxu3 }
  0xc7   : > { %v1158_v20 = vrot.slane %v899_v19, 7 }
  0xc8   : > { %1566 = vst [vmem:[%s2022_s19 + $0x158] sm:$0xff] %v1491_v17  ;;  %v1454_v21 = vmax.f32 %v1379_v18, 0.0  ;;  %v788_v22 = vpop.f32.mrf.mxu1  ;;  %v653_v23 = vpop.f32.mrf.mxu2 }
  0xc9   : > { %v1084_v26 = vrot.slane %v788_v22, 7  ;;  %v1159_v27 = vsel %vm1070_vm1, %v1156_v4, %v1158_v20 }
  0xca   : > { %1529 = vst [vmem:[%s2022_s19 + $0x30] sm:$0xff] %v1454_v21  ;;  %v1339_v28 = vadd.f32 %v1159_v27, %v653_v23  ;;  %v542_v29 = vpop.f32.mrf.mxu0 }
  0xcb   : > { %v1085_v30 = vsel %vm1070_vm1, %v1082_v10, %v1084_v26  ;;  %1761 = vmatmul.msk.f32.gmra.mxu1 %vm278_vm0, %v221_v24  ;;  %1799 = vmatmul.msk.f32.gmra.mxu3 %vm278_vm0, %v259_v25 }
  0xcc   : > { %v1417_v31 = vadd.f32 %v2013_v45, %v1339_v28  ;;  %v1302_v32 = vadd.f32 %v1085_v30, %v542_v29  ;;  %v225_v28 = vld [vmem:[%s1904_s8 + $0xd8] sm:$0xff]  ;;  %v263_v29 = vld [vmem:[%s1904_s8 + $0x208] sm:$0xff] }
  0xcd   : > { %1686 = vmatmul.msk.f32.gmra.mxu0 %vm278_vm0, %v221_v24  ;;  %1724 = vmatmul.msk.f32.gmra.mxu2 %vm278_vm0, %v259_v25 }
  0xce   : > { %v1492_v33 = vmax.f32 %v1417_v31, 0.0  ;;  %v1380_v34 = vadd.f32 %v2013_v45, %v1302_v32  ;;  %v902_v35 = vpop.f32.mrf.mxu3 }
  0xcf   : > { %v1160_v36 = vrot.slane %v902_v35, 7 }
  0xd0   : > { %1567 = vst [vmem:[%s2022_s19 + $0x160] sm:$0xff] %v1492_v33  ;;  %v1455_v37 = vmax.f32 %v1380_v34, 0.0  ;;  %v791_v38 = vpop.f32.mrf.mxu1  ;;  %v656_v39 = vpop.f32.mrf.mxu2 }
  0xd1   : > { %v1086_v42 = vrot.slane %v791_v38, 7  ;;  %v1161_v43 = vsel %vm1070_vm1, %v1158_v20, %v1160_v36 }
  0xd2   : > { %1530 = vst [vmem:[%s2022_s19 + $0x38] sm:$0xff] %v1455_v37  ;;  %v1340_v44 = vadd.f32 %v1161_v43, %v656_v39  ;;  %v545_v46 = vpop.f32.mrf.mxu0 }
  0xd3   : > { %v1087_v47 = vsel %vm1070_vm1, %v1084_v26, %v1086_v42  ;;  %1762 = vmatmul.msk.f32.gmra.mxu1 %vm278_vm0, %v222_v40  ;;  %1800 = vmatmul.msk.f32.gmra.mxu3 %vm278_vm0, %v260_v41 }
  0xd4   : > { %v1418_v48 = vadd.f32 %v2013_v45, %v1340_v44  ;;  %v1303_v49 = vadd.f32 %v1087_v47, %v545_v46  ;;  %v226_v44 = vld [vmem:[%s1904_s8 + $0xe0] sm:$0xff]  ;;  %v264_v46 = vld [vmem:[%s1904_s8 + $0x210] sm:$0xff] }
  0xd5   : > { %1687 = vmatmul.msk.f32.gmra.mxu0 %vm278_vm0, %v222_v40  ;;  %1725 = vmatmul.msk.f32.gmra.mxu2 %vm278_vm0, %v260_v41 }
  0xd6   : > { %v1493_v50 = vmax.f32 %v1418_v48, 0.0  ;;  %v1381_v52 = vadd.f32 %v2013_v45, %v1303_v49  ;;  %v905_v53 = vpop.f32.mrf.mxu3 }
  0xd7   : > { %v1162_v55 = vrot.slane %v905_v53, 7 }
  0xd8   : > { %1568 = vst [vmem:[%s2022_s19 + $0x168] sm:$0xff] %v1493_v50  ;;  %v1456_v56 = vmax.f32 %v1381_v52, 0.0  ;;  %v794_v57 = vpop.f32.mrf.mxu1  ;;  %v659_v58 = vpop.f32.mrf.mxu2 }
  0xd9   : > { %v1088_v61 = vrot.slane %v794_v57, 7  ;;  %v1163_v62 = vsel %vm1070_vm1, %v1160_v36, %v1162_v55 }
  0xda   : > { %1531 = vst [vmem:[%s2022_s19 + $0x40] sm:$0xff] %v1456_v56  ;;  %v1341_v0 = vadd.f32 %v1163_v62, %v659_v58  ;;  %v548_v1 = vpop.f32.mrf.mxu0 }
  0xdb   : > { %v1089_v2 = vsel %vm1070_vm1, %v1086_v42, %v1088_v61  ;;  %1763 = vmatmul.msk.f32.gmra.mxu1 %vm278_vm0, %v223_v59  ;;  %1801 = vmatmul.msk.f32.gmra.mxu3 %vm278_vm0, %v261_v60 }
  0xdc   : > { %v1419_v3 = vadd.f32 %v2013_v45, %v1341_v0  ;;  %v1304_v4 = vadd.f32 %v1089_v2, %v548_v1  ;;  %v227_v0 = vld [vmem:[%s1904_s8 + $0xe8] sm:$0xff]  ;;  %v265_v1 = vld [vmem:[%s1904_s8 + $0x218] sm:$0xff] }
  0xdd   : > { %1688 = vmatmul.msk.f32.gmra.mxu0 %vm278_vm0, %v223_v59  ;;  %1726 = vmatmul.msk.f32.gmra.mxu2 %vm278_vm0, %v261_v60 }
  0xde   : > { %v1494_v5 = vmax.f32 %v1419_v3, 0.0  ;;  %v1382_v6 = vadd.f32 %v2013_v45, %v1304_v4  ;;  %v908_v7 = vpop.f32.mrf.mxu3 }
  0xdf   : > { %v1164_v8 = vrot.slane %v908_v7, 7 }
  0xe0   : > { %1569 = vst [vmem:[%s2022_s19 + $0x170] sm:$0xff] %v1494_v5  ;;  %v1457_v9 = vmax.f32 %v1382_v6, 0.0  ;;  %v797_v10 = vpop.f32.mrf.mxu1  ;;  %v662_v11 = vpop.f32.mrf.mxu2 }
  0xe1   : > { %v1090_v14 = vrot.slane %v797_v10, 7  ;;  %v1165_v15 = vsel %vm1070_vm1, %v1162_v55, %v1164_v8 }
  0xe2   : > { %1532 = vst [vmem:[%s2022_s19 + $0x48] sm:$0xff] %v1457_v9  ;;  %v1342_v16 = vadd.f32 %v1165_v15, %v662_v11  ;;  %v551_v17 = vpop.f32.mrf.mxu0 }
  0xe3   : > { %v1091_v18 = vsel %vm1070_vm1, %v1088_v61, %v1090_v14  ;;  %1764 = vmatmul.msk.f32.gmra.mxu1 %vm278_vm0, %v224_v12  ;;  %1802 = vmatmul.msk.f32.gmra.mxu3 %vm278_vm0, %v262_v13 }
  0xe4   : > { %v1420_v19 = vadd.f32 %v2013_v45, %v1342_v16  ;;  %v1305_v20 = vadd.f32 %v1091_v18, %v551_v17  ;;  %v228_v16 = vld [vmem:[%s1904_s8 + $0xf0] sm:$0xff]  ;;  %v266_v17 = vld [vmem:[%s1904_s8 + $0x220] sm:$0xff] }
  0xe5   : > { %1689 = vmatmul.msk.f32.gmra.mxu0 %vm278_vm0, %v224_v12  ;;  %1727 = vmatmul.msk.f32.gmra.mxu2 %vm278_vm0, %v262_v13 }
  0xe6   : > { %v1495_v21 = vmax.f32 %v1420_v19, 0.0  ;;  %v1383_v22 = vadd.f32 %v2013_v45, %v1305_v20  ;;  %v911_v23 = vpop.f32.mrf.mxu3 }
  0xe7   : > { %v1166_v24 = vrot.slane %v911_v23, 7 }
  0xe8   : > { %1570 = vst [vmem:[%s2022_s19 + $0x178] sm:$0xff] %v1495_v21  ;;  %v1458_v25 = vmax.f32 %v1383_v22, 0.0  ;;  %v800_v26 = vpop.f32.mrf.mxu1  ;;  %v665_v27 = vpop.f32.mrf.mxu2 }
  0xe9   : > { %v1092_v30 = vrot.slane %v800_v26, 7  ;;  %v1167_v31 = vsel %vm1070_vm1, %v1164_v8, %v1166_v24 }
  0xea   : > { %1533 = vst [vmem:[%s2022_s19 + $0x50] sm:$0xff] %v1458_v25  ;;  %v1343_v32 = vadd.f32 %v1167_v31, %v665_v27  ;;  %v554_v33 = vpop.f32.mrf.mxu0 }
  0xeb   : > { %v1093_v34 = vsel %vm1070_vm1, %v1090_v14, %v1092_v30  ;;  %1765 = vmatmul.msk.f32.gmra.mxu1 %vm278_vm0, %v225_v28  ;;  %1803 = vmatmul.msk.f32.gmra.mxu3 %vm278_vm0, %v263_v29 }
  0xec   : > { %v1421_v35 = vadd.f32 %v2013_v45, %v1343_v32  ;;  %v1306_v36 = vadd.f32 %v1093_v34, %v554_v33  ;;  %v229_v32 = vld [vmem:[%s1904_s8 + $0xf8] sm:$0xff]  ;;  %v267_v33 = vld [vmem:[%s1904_s8 + $0x228] sm:$0xff] }
  0xed   : > { %1690 = vmatmul.msk.f32.gmra.mxu0 %vm278_vm0, %v225_v28  ;;  %1728 = vmatmul.msk.f32.gmra.mxu2 %vm278_vm0, %v263_v29 }
  0xee   : > { %v1496_v37 = vmax.f32 %v1421_v35, 0.0  ;;  %v1384_v38 = vadd.f32 %v2013_v45, %v1306_v36  ;;  %v914_v39 = vpop.f32.mrf.mxu3 }
  0xef   : > { %v1168_v40 = vrot.slane %v914_v39, 7 }
  0xf0   : > { %1571 = vst [vmem:[%s2022_s19 + $0x180] sm:$0xff] %v1496_v37  ;;  %v1459_v41 = vmax.f32 %v1384_v38, 0.0  ;;  %v803_v42 = vpop.f32.mrf.mxu1  ;;  %v668_v43 = vpop.f32.mrf.mxu2 }
  0xf1   : > { %v1094_v47 = vrot.slane %v803_v42, 7  ;;  %v1169_v48 = vsel %vm1070_vm1, %v1166_v24, %v1168_v40 }
  0xf2   : > { %1534 = vst [vmem:[%s2022_s19 + $0x58] sm:$0xff] %v1459_v41  ;;  %v1344_v49 = vadd.f32 %v1169_v48, %v668_v43  ;;  %v557_v50 = vpop.f32.mrf.mxu0 }
  0xf3   : > { %v1095_v52 = vsel %vm1070_vm1, %v1092_v30, %v1094_v47  ;;  %1766 = vmatmul.msk.f32.gmra.mxu1 %vm278_vm0, %v226_v44  ;;  %1804 = vmatmul.msk.f32.gmra.mxu3 %vm278_vm0, %v264_v46 }
  0xf4   : > { %v1422_v53 = vadd.f32 %v2013_v45, %v1344_v49  ;;  %v1307_v55 = vadd.f32 %v1095_v52, %v557_v50  ;;  %v230_v49 = vld [vmem:[%s1904_s8 + $0x100] sm:$0xff]  ;;  %v268_v50 = vld [vmem:[%s1904_s8 + $0x230] sm:$0xff] }
  0xf5   : > { %1691 = vmatmul.msk.f32.gmra.mxu0 %vm278_vm0, %v226_v44  ;;  %1729 = vmatmul.msk.f32.gmra.mxu2 %vm278_vm0, %v264_v46 }
  0xf6   : > { %v1497_v56 = vmax.f32 %v1422_v53, 0.0  ;;  %v1385_v57 = vadd.f32 %v2013_v45, %v1307_v55  ;;  %v917_v58 = vpop.f32.mrf.mxu3 }
  0xf7   : > { %v1170_v59 = vrot.slane %v917_v58, 7 }
  0xf8   : > { %1572 = vst [vmem:[%s2022_s19 + $0x188] sm:$0xff] %v1497_v56  ;;  %v1460_v60 = vmax.f32 %v1385_v57, 0.0  ;;  %v806_v61 = vpop.f32.mrf.mxu1  ;;  %v671_v62 = vpop.f32.mrf.mxu2 }
  0xf9   : > { %v1096_v2 = vrot.slane %v806_v61, 7  ;;  %v1171_v3 = vsel %vm1070_vm1, %v1168_v40, %v1170_v59 }
  0xfa   : > { %1535 = vst [vmem:[%s2022_s19 + $0x60] sm:$0xff] %v1460_v60  ;;  %v1345_v4 = vadd.f32 %v1171_v3, %v671_v62  ;;  %v560_v5 = vpop.f32.mrf.mxu0 }
  0xfb   : > { %v1097_v6 = vsel %vm1070_vm1, %v1094_v47, %v1096_v2  ;;  %1767 = vmatmul.msk.f32.gmra.mxu1 %vm278_vm0, %v227_v0  ;;  %1805 = vmatmul.msk.f32.gmra.mxu3 %vm278_vm0, %v265_v1 }
  0xfc   : > { %v1423_v7 = vadd.f32 %v2013_v45, %v1345_v4  ;;  %v1308_v8 = vadd.f32 %v1097_v6, %v560_v5  ;;  %v231_v4 = vld [vmem:[%s1904_s8 + $0x108] sm:$0xff]  ;;  %v269_v5 = vld [vmem:[%s1904_s8 + $0x238] sm:$0xff] }
  0xfd   : > { %1692 = vmatmul.msk.f32.gmra.mxu0 %vm278_vm0, %v227_v0  ;;  %1730 = vmatmul.msk.f32.gmra.mxu2 %vm278_vm0, %v265_v1 }
  0xfe   : > { %v1498_v9 = vmax.f32 %v1423_v7, 0.0  ;;  %v1386_v10 = vadd.f32 %v2013_v45, %v1308_v8  ;;  %v920_v11 = vpop.f32.mrf.mxu3 }
  0xff   : > { %v1172_v12 = vrot.slane %v920_v11, 7 }
 0x100   : > { %1573 = vst [vmem:[%s2022_s19 + $0x190] sm:$0xff] %v1498_v9  ;;  %v1461_v13 = vmax.f32 %v1386_v10, 0.0  ;;  %v809_v14 = vpop.f32.mrf.mxu1  ;;  %v674_v15 = vpop.f32.mrf.mxu2 }
 0x101   : > { %v1098_v18 = vrot.slane %v809_v14, 7  ;;  %v1173_v19 = vsel %vm1070_vm1, %v1170_v59, %v1172_v12 }
 0x102   : > { %1536 = vst [vmem:[%s2022_s19 + $0x68] sm:$0xff] %v1461_v13  ;;  %v1346_v20 = vadd.f32 %v1173_v19, %v674_v15  ;;  %v563_v21 = vpop.f32.mrf.mxu0 }
 0x103   : > { %v1099_v22 = vsel %vm1070_vm1, %v1096_v2, %v1098_v18  ;;  %1768 = vmatmul.msk.f32.gmra.mxu1 %vm278_vm0, %v228_v16  ;;  %1806 = vmatmul.msk.f32.gmra.mxu3 %vm278_vm0, %v266_v17 }
 0x104   : > { %v1424_v23 = vadd.f32 %v2013_v45, %v1346_v20  ;;  %v1309_v24 = vadd.f32 %v1099_v22, %v563_v21  ;;  %v232_v20 = vld [vmem:[%s1904_s8 + $0x110] sm:$0xff]  ;;  %v270_v21 = vld [vmem:[%s1904_s8 + $0x240] sm:$0xff] }
 0x105   : > { %1693 = vmatmul.msk.f32.gmra.mxu0 %vm278_vm0, %v228_v16  ;;  %1731 = vmatmul.msk.f32.gmra.mxu2 %vm278_vm0, %v266_v17 }
 0x106   : > { %v1499_v25 = vmax.f32 %v1424_v23, 0.0  ;;  %v1387_v26 = vadd.f32 %v2013_v45, %v1309_v24  ;;  %v923_v27 = vpop.f32.mrf.mxu3 }
 0x107   : > { %v1174_v28 = vrot.slane %v923_v27, 7 }
 0x108   : > { %1574 = vst [vmem:[%s2022_s19 + $0x198] sm:$0xff] %v1499_v25  ;;  %v1462_v29 = vmax.f32 %v1387_v26, 0.0  ;;  %v812_v30 = vpop.f32.mrf.mxu1  ;;  %v677_v31 = vpop.f32.mrf.mxu2 }
 0x109   : > { %v1100_v34 = vrot.slane %v812_v30, 7  ;;  %v1175_v35 = vsel %vm1070_vm1, %v1172_v12, %v1174_v28 }
 0x10a   : > { %1537 = vst [vmem:[%s2022_s19 + $0x70] sm:$0xff] %v1462_v29  ;;  %v1347_v36 = vadd.f32 %v1175_v35, %v677_v31  ;;  %v566_v37 = vpop.f32.mrf.mxu0 }
 0x10b   : > { %v1101_v38 = vsel %vm1070_vm1, %v1098_v18, %v1100_v34  ;;  %1769 = vmatmul.msk.f32.gmra.mxu1 %vm278_vm0, %v229_v32  ;;  %1807 = vmatmul.msk.f32.gmra.mxu3 %vm278_vm0, %v267_v33 }
 0x10c   : > { %v1425_v39 = vadd.f32 %v2013_v45, %v1347_v36  ;;  %v1310_v40 = vadd.f32 %v1101_v38, %v566_v37  ;;  %v233_v36 = vld [vmem:[%s1904_s8 + $0x118] sm:$0xff]  ;;  %v271_v37 = vld [vmem:[%s1904_s8 + $0x248] sm:$0xff] }
 0x10d   : > { %1694 = vmatmul.msk.f32.gmra.mxu0 %vm278_vm0, %v229_v32  ;;  %1732 = vmatmul.msk.f32.gmra.mxu2 %vm278_vm0, %v267_v33 }
 0x10e   : > { %v1500_v41 = vmax.f32 %v1425_v39, 0.0  ;;  %v1388_v42 = vadd.f32 %v2013_v45, %v1310_v40  ;;  %v926_v43 = vpop.f32.mrf.mxu3 }
 0x10f   : > { %v1176_v44 = vrot.slane %v926_v43, 7 }
 0x110   : > { %1575 = vst [vmem:[%s2022_s19 + $0x1a0] sm:$0xff] %v1500_v41  ;;  %v1463_v46 = vmax.f32 %v1388_v42, 0.0  ;;  %v815_v47 = vpop.f32.mrf.mxu1  ;;  %v680_v48 = vpop.f32.mrf.mxu2 }
 0x111   : > { %v1102_v52 = vrot.slane %v815_v47, 7  ;;  %v1177_v53 = vsel %vm1070_vm1, %v1174_v28, %v1176_v44 }
 0x112   : > { %1538 = vst [vmem:[%s2022_s19 + $0x78] sm:$0xff] %v1463_v46  ;;  %v1348_v55 = vadd.f32 %v1177_v53, %v680_v48  ;;  %v569_v56 = vpop.f32.mrf.mxu0 }
 0x113   : > { %v1103_v57 = vsel %vm1070_vm1, %v1100_v34, %v1102_v52  ;;  %1770 = vmatmul.msk.f32.gmra.mxu1 %vm278_vm0, %v230_v49  ;;  %1808 = vmatmul.msk.f32.gmra.mxu3 %vm278_vm0, %v268_v50 }
 0x114   : > { %v1426_v58 = vadd.f32 %v2013_v45, %v1348_v55  ;;  %v1311_v59 = vadd.f32 %v1103_v57, %v569_v56  ;;  %v234_v55 = vld [vmem:[%s1904_s8 + $0x120] sm:$0xff]  ;;  %v272_v56 = vld [vmem:[%s1904_s8 + $0x250] sm:$0xf] }
 0x115   : > { %1695 = vmatmul.msk.f32.gmra.mxu0 %vm278_vm0, %v230_v49  ;;  %1733 = vmatmul.msk.f32.gmra.mxu2 %vm278_vm0, %v268_v50 }
 0x116   : > { %v1501_v60 = vmax.f32 %v1426_v58, 0.0  ;;  %v1389_v61 = vadd.f32 %v2013_v45, %v1311_v59  ;;  %v929_v62 = vpop.f32.mrf.mxu3 }
 0x117   : > { %v1178_v0 = vrot.slane %v929_v62, 7 }
 0x118   : > { %1576 = vst [vmem:[%s2022_s19 + $0x1a8] sm:$0xff] %v1501_v60  ;;  %v1464_v1 = vmax.f32 %v1389_v61, 0.0  ;;  %v818_v2 = vpop.f32.mrf.mxu1  ;;  %v683_v3 = vpop.f32.mrf.mxu2 }
 0x119   : > { %v1104_v6 = vrot.slane %v818_v2, 7  ;;  %v1179_v7 = vsel %vm1070_vm1, %v1176_v44, %v1178_v0 }
 0x11a   : > { %1539 = vst [vmem:[%s2022_s19 + $0x80] sm:$0xff] %v1464_v1  ;;  %v1349_v8 = vadd.f32 %v1179_v7, %v683_v3  ;;  %v572_v9 = vpop.f32.mrf.mxu0 }
 0x11b   : > { %v1105_v10 = vsel %vm1070_vm1, %v1102_v52, %v1104_v6  ;;  %1771 = vmatmul.msk.f32.gmra.mxu1 %vm278_vm0, %v231_v4  ;;  %1809 = vmatmul.msk.f32.gmra.mxu3 %vm278_vm0, %v269_v5 }
 0x11c   : > { %v1427_v11 = vadd.f32 %v2013_v45, %v1349_v8  ;;  %v1312_v12 = vadd.f32 %v1105_v10, %v572_v9  ;;  %v235_v8 = vld [vmem:[%s1904_s8 + $0x128] sm:$0xff] }
 0x11d   : > { %1696 = vmatmul.msk.f32.gmra.mxu0 %vm278_vm0, %v231_v4  ;;  %1734 = vmatmul.msk.f32.gmra.mxu2 %vm278_vm0, %v269_v5 }
 0x11e   : > { %v1502_v13 = vmax.f32 %v1427_v11, 0.0  ;;  %v1390_v14 = vadd.f32 %v2013_v45, %v1312_v12  ;;  %v932_v15 = vpop.f32.mrf.mxu3 }
 0x11f   : > { %v1180_v16 = vrot.slane %v932_v15, 7 }
 0x120   : > { %1577 = vst [vmem:[%s2022_s19 + $0x1b0] sm:$0xff] %v1502_v13  ;;  %v1465_v17 = vmax.f32 %v1390_v14, 0.0  ;;  %v821_v18 = vpop.f32.mrf.mxu1  ;;  %v686_v19 = vpop.f32.mrf.mxu2 }
 0x121   : > { %v1106_v22 = vrot.slane %v821_v18, 7  ;;  %v1181_v23 = vsel %vm1070_vm1, %v1178_v0, %v1180_v16 }
 0x122   : > { %1540 = vst [vmem:[%s2022_s19 + $0x88] sm:$0xff] %v1465_v17  ;;  %v1350_v24 = vadd.f32 %v1181_v23, %v686_v19  ;;  %v575_v25 = vpop.f32.mrf.mxu0 }
 0x123   : > { %v1107_v26 = vsel %vm1070_vm1, %v1104_v6, %v1106_v22  ;;  %1772 = vmatmul.msk.f32.gmra.mxu1 %vm278_vm0, %v232_v20  ;;  %1810 = vmatmul.msk.f32.gmra.mxu3 %vm278_vm0, %v270_v21 }
 0x124   : > { %v1428_v27 = vadd.f32 %v2013_v45, %v1350_v24  ;;  %v1313_v28 = vadd.f32 %v1107_v26, %v575_v25 }
 0x125   : > { %1697 = vmatmul.msk.f32.gmra.mxu0 %vm278_vm0, %v232_v20  ;;  %1735 = vmatmul.msk.f32.gmra.mxu2 %vm278_vm0, %v270_v21 }
 0x126   : > { %v1503_v29 = vmax.f32 %v1428_v27, 0.0  ;;  %v1391_v30 = vadd.f32 %v2013_v45, %v1313_v28  ;;  %v935_v31 = vpop.f32.mrf.mxu3 }
 0x127   : > { %v1182_v32 = vrot.slane %v935_v31, 7 }
 0x128   : > { %1578 = vst [vmem:[%s2022_s19 + $0x1b8] sm:$0xff] %v1503_v29  ;;  %v1466_v33 = vmax.f32 %v1391_v30, 0.0  ;;  %v824_v34 = vpop.f32.mrf.mxu1  ;;  %v689_v35 = vpop.f32.mrf.mxu2 }
 0x129   : > { %v1108_v38 = vrot.slane %v824_v34, 7  ;;  %v1183_v39 = vsel %vm1070_vm1, %v1180_v16, %v1182_v32 }
 0x12a   : > { %1541 = vst [vmem:[%s2022_s19 + $0x90] sm:$0xff] %v1466_v33  ;;  %v1351_v40 = vadd.f32 %v1183_v39, %v689_v35  ;;  %v578_v41 = vpop.f32.mrf.mxu0 }
 0x12b   : > { %v1109_v42 = vsel %vm1070_vm1, %v1106_v22, %v1108_v38  ;;  %1773 = vmatmul.msk.f32.gmra.mxu1 %vm278_vm0, %v233_v36  ;;  %1811 = vmatmul.msk.f32.gmra.mxu3 %vm278_vm0, %v271_v37 }
 0x12c   : > { %v1429_v43 = vadd.f32 %v2013_v45, %v1351_v40  ;;  %v1314_v44 = vadd.f32 %v1109_v42, %v578_v41 }
 0x12d   : > { %1698 = vmatmul.msk.f32.gmra.mxu0 %vm278_vm0, %v233_v36  ;;  %1736 = vmatmul.msk.f32.gmra.mxu2 %vm278_vm0, %v271_v37 }
 0x12e   : > { %v1504_v46 = vmax.f32 %v1429_v43, 0.0  ;;  %v1392_v47 = vadd.f32 %v2013_v45, %v1314_v44  ;;  %v938_v48 = vpop.f32.mrf.mxu3 }
 0x12f   : > { %v1184_v49 = vrot.slane %v938_v48, 7 }
 0x130   : > { %1579 = vst [vmem:[%s2022_s19 + $0x1c0] sm:$0xff] %v1504_v46  ;;  %v1467_v50 = vmax.f32 %v1392_v47, 0.0  ;;  %v827_v52 = vpop.f32.mrf.mxu1  ;;  %v692_v53 = vpop.f32.mrf.mxu2 }
 0x131   : > { %v1110_v57 = vrot.slane %v827_v52, 7  ;;  %v1185_v58 = vsel %vm1070_vm1, %v1182_v32, %v1184_v49 }
 0x132   : > { %1542 = vst [vmem:[%s2022_s19 + $0x98] sm:$0xff] %v1467_v50  ;;  %v1352_v59 = vadd.f32 %v1185_v58, %v692_v53  ;;  %v581_v60 = vpop.f32.mrf.mxu0 }
 0x133   : > { %v1111_v61 = vsel %vm1070_vm1, %v1108_v38, %v1110_v57  ;;  %1774 = vmatmul.msk.f32.gmra.mxu1 %vm278_vm0, %v234_v55  ;;  %1812 = vmatmul.msk.f32.gmra.mxu3 %vm278_vm0, %v272_v56 }
 0x134   : > { %v1430_v62 = vadd.f32 %v2013_v45, %v1352_v59  ;;  %v1315_v0 = vadd.f32 %v1111_v61, %v581_v60 }
 0x135   : > { %1699 = vmatmul.msk.f32.gmra.mxu0 %vm278_vm0, %v234_v55  ;;  %1737 = vmatmul.msk.f32.gmra.mxu2 %vm278_vm0, %v272_v56 }
 0x136   : > { %v1505_v1 = vmax.f32 %v1430_v62, 0.0  ;;  %v1393_v2 = vadd.f32 %v2013_v45, %v1315_v0  ;;  %v941_v3 = vpop.f32.mrf.mxu3  ;;  %v2300_v62 = vld [vmem:[%s2397_s3] ss:$0 sm:$0xff] }
 0x137   : > { %v1186_v4 = vrot.slane %v941_v3, 7 }
 0x138   : > { %1580 = vst [vmem:[%s2022_s19 + $0x1c8] sm:$0xff] %v1505_v1  ;;  %v1468_v5 = vmax.f32 %v1393_v2, 0.0  ;;  %v830_v6 = vpop.f32.mrf.mxu1  ;;  %v695_v7 = vpop.f32.mrf.mxu2 }
 0x139   : > { %v1112_v9 = vrot.slane %v830_v6, 7  ;;  %v1187_v10 = vsel %vm1070_vm1, %v1184_v49, %v1186_v4 }
 0x13a   : > { %1543 = vst [vmem:[%s2022_s19 + $0xa0] sm:$0xff] %v1468_v5  ;;  %v1353_v11 = vadd.f32 %v1187_v10, %v695_v7  ;;  %v584_v12 = vpop.f32.mrf.mxu0 }
 0x13b   : > { %v1113_v13 = vsel %vm1070_vm1, %v1110_v57, %v1112_v9  ;;  %1775 = vmatmul.msk.f32.gmra.mxu1 %vm278_vm0, %v235_v8 }
 0x13c   : > { %v1431_v14 = vadd.f32 %v2013_v45, %v1353_v11  ;;  %v1316_v15 = vadd.f32 %v1113_v13, %v584_v12 }
 0x13d   : > { %1700 = vmatmul.msk.f32.gmra.mxu0 %vm278_vm0, %v235_v8 }
 0x13e   : > { %v1506_v16 = vmax.f32 %v1431_v14, 0.0  ;;  %v1394_v17 = vadd.f32 %v2013_v45, %v1316_v15  ;;  %v944_v18 = vpop.f32.mrf.mxu3 }
 0x13f   : > { %v1188_v19 = vrot.slane %v944_v18, 7 }
 0x140   : > { %1581 = vst [vmem:[%s2022_s19 + $0x1d0] sm:$0xff] %v1506_v16  ;;  %v1469_v20 = vmax.f32 %v1394_v17, 0.0  ;;  %v833_v21 = vpop.f32.mrf.mxu1  ;;  %v698_v22 = vpop.f32.mrf.mxu2 }
 0x141   : > { %v1114_v23 = vrot.slane %v833_v21, 7  ;;  %v1189_v24 = vsel %vm1070_vm1, %v1186_v4, %v1188_v19 }
 0x142   : > { %1544 = vst [vmem:[%s2022_s19 + $0xa8] sm:$0xff] %v1469_v20  ;;  %v1354_v25 = vadd.f32 %v1189_v24, %v698_v22  ;;  %v587_v26 = vpop.f32.mrf.mxu0 }
 0x143   : > { %v1115_v27 = vsel %vm1070_vm1, %v1112_v9, %v1114_v23 }
 0x144   : > { %v1432_v28 = vadd.f32 %v2013_v45, %v1354_v25  ;;  %v1317_v29 = vadd.f32 %v1115_v27, %v587_v26 }
 0x146   : > { %v1507_v30 = vmax.f32 %v1432_v28, 0.0  ;;  %v1395_v31 = vadd.f32 %v2013_v45, %v1317_v29  ;;  %v947_v32 = vpop.f32.mrf.mxu3 }
 0x147   : > { %v1190_v33 = vrot.slane %v947_v32, 7 }
 0x148   : > { %1582 = vst [vmem:[%s2022_s19 + $0x1d8] sm:$0xff] %v1507_v30  ;;  %v1470_v34 = vmax.f32 %v1395_v31, 0.0  ;;  %v836_v35 = vpop.f32.mrf.mxu1  ;;  %v701_v36 = vpop.f32.mrf.mxu2 }
 0x149   : > { %v1116_v37 = vrot.slane %v836_v35, 7  ;;  %v1191_v38 = vsel %vm1070_vm1, %v1188_v19, %v1190_v33 }
 0x14a   : > { %1545 = vst [vmem:[%s2022_s19 + $0xb0] sm:$0xff] %v1470_v34  ;;  %v1355_v39 = vadd.f32 %v1191_v38, %v701_v36  ;;  %v590_v40 = vpop.f32.mrf.mxu0 }
 0x14b   : > { %v1117_v41 = vsel %vm1070_vm1, %v1114_v23, %v1116_v37 }
 0x14c   : > { %v1433_v42 = vadd.f32 %v2013_v45, %v1355_v39  ;;  %v1318_v43 = vadd.f32 %v1117_v41, %v590_v40 }
 0x14e   : > { %v1508_v44 = vmax.f32 %v1433_v42, 0.0  ;;  %v1396_v46 = vadd.f32 %v2013_v45, %v1318_v43  ;;  %v950_v47 = vpop.f32.mrf.mxu3 }
 0x14f   : > { %v1192_v48 = vrot.slane %v950_v47, 7 }
 0x150   : > { %1583 = vst [vmem:[%s2022_s19 + $0x1e0] sm:$0xff] %v1508_v44  ;;  %v1471_v49 = vmax.f32 %v1396_v46, 0.0  ;;  %v839_v50 = vpop.f32.mrf.mxu1  ;;  %v704_v52 = vpop.f32.mrf.mxu2 }
 0x151   : > { %v1118_v53 = vrot.slane %v839_v50, 7  ;;  %v1193_v55 = vsel %vm1070_vm1, %v1190_v33, %v1192_v48 }
 0x152   : > { %1546 = vst [vmem:[%s2022_s19 + $0xb8] sm:$0xff] %v1471_v49  ;;  %v1356_v56 = vadd.f32 %v1193_v55, %v704_v52  ;;  %v593_v57 = vpop.f32.mrf.mxu0 }
 0x153   : > { %v1119_v58 = vsel %vm1070_vm1, %v1116_v37, %v1118_v53 }
 0x154   : > { %v1434_v59 = vadd.f32 %v2013_v45, %v1356_v56  ;;  %v1319_v60 = vadd.f32 %v1119_v58, %v593_v57 }
 0x156   : > { %v1509_v61 = vmax.f32 %v1434_v59, 0.0  ;;  %v1397_v0 = vadd.f32 %v2300_v62, %v1319_v60  ;;  %v953_v1 = vpop.f32.mrf.mxu3 }
 0x157   : > { %v1194_v2 = vrot.slane %v953_v1, 7 }
 0x158   : > { %1584 = vst [vmem:[%s2022_s19 + $0x1e8] sm:$0xff] %v1509_v61  ;;  %v1472_v3 = vmax.f32 %v1397_v0, 0.0  ;;  %v842_v4 = vpop.f32.mrf.mxu1  ;;  %v707_v5 = vpop.f32.mrf.mxu2 }
 0x159   : > { %v1120_v6 = vrot.slane %v842_v4, 7  ;;  %v1195_v7 = vsel %vm1070_vm1, %v1192_v48, %v1194_v2 }
 0x15a   : > { %1547 = vst [vmem:[%s2022_s19 + $0xc0] sm:$0xff] %v1472_v3  ;;  %v1357_v45 = vadd.f32 %v1195_v7, %v707_v5  ;;  %v596_v8 = vpop.f32.mrf.mxu0 }
 0x15b   : > { %v1121_v9 = vsel %vm1070_vm1, %v1118_v53, %v1120_v6 }
 0x15c   : > { %v1435_v10 = vadd.f32 %v2300_v62, %v1357_v45  ;;  %v1320_v11 = vadd.f32 %v1121_v9, %v596_v8 }
 0x15e   : > { %v1510_v12 = vmax.f32 %v1435_v10, 0.0  ;;  %v1398_v13 = vadd.f32 %v2300_v62, %v1320_v11  ;;  %v956_v14 = vpop.f32.mrf.mxu3 }
 0x15f   : > { %v1196_v15 = vrot.slane %v956_v14, 7 }
 0x160   : > { %1585 = vst [vmem:[%s2022_s19 + $0x1f0] sm:$0xff] %v1510_v12  ;;  %v1473_v16 = vmax.f32 %v1398_v13, 0.0  ;;  %v845_v17 = vpop.f32.mrf.mxu1  ;;  %v710_v18 = vpop.f32.mrf.mxu2 }
 0x161   : > { %v1122_v19 = vrot.slane %v845_v17, 7  ;;  %v1197_v20 = vsel %vm1070_vm1, %v1194_v2, %v1196_v15 }
 0x162   : > { %1548 = vst [vmem:[%s2022_s19 + $0xc8] sm:$0xff] %v1473_v16  ;;  %v1358_v21 = vadd.f32 %v1197_v20, %v710_v18  ;;  %v599_v22 = vpop.f32.mrf.mxu0 }
 0x163   : > { %v1123_v23 = vsel %vm1070_vm1, %v1120_v6, %v1122_v19 }
 0x164   : > { %v1436_v24 = vadd.f32 %v2300_v62, %v1358_v21  ;;  %v1321_v25 = vadd.f32 %v1123_v23, %v599_v22 }
 0x166   : > { %v1511_v26 = vmax.f32 %v1436_v24, 0.0  ;;  %v1399_v27 = vadd.f32 %v2300_v62, %v1321_v25  ;;  %v959_v28 = vpop.f32.mrf.mxu3 }
 0x167   : > { %v1198_v29 = vrot.slane %v959_v28, 7 }
 0x168   : > { %1586 = vst [vmem:[%s2022_s19 + $0x1f8] sm:$0xff] %v1511_v26  ;;  %v1474_v30 = vmax.f32 %v1399_v27, 0.0  ;;  %v848_v31 = vpop.f32.mrf.mxu1  ;;  %v713_v32 = vpop.f32.mrf.mxu2 }
 0x169   : > { %v1124_v33 = vrot.slane %v848_v31, 7  ;;  %v1199_v34 = vsel %vm1070_vm1, %v1196_v15, %v1198_v29 }
 0x16a   : > { %1549 = vst [vmem:[%s2022_s19 + $0xd0] sm:$0xff] %v1474_v30  ;;  %v1359_v35 = vadd.f32 %v1199_v34, %v713_v32  ;;  %v602_v36 = vpop.f32.mrf.mxu0 }
 0x16b   : > { %v1125_v37 = vsel %vm1070_vm1, %v1122_v19, %v1124_v33 }
 0x16c   : > { %v1437_v38 = vadd.f32 %v2300_v62, %v1359_v35  ;;  %v1322_v39 = vadd.f32 %v1125_v37, %v602_v36 }
 0x16e   : > { %v1512_v40 = vmax.f32 %v1437_v38, 0.0  ;;  %v1400_v41 = vadd.f32 %v2300_v62, %v1322_v39  ;;  %v962_v42 = vpop.f32.mrf.mxu3 }
 0x16f   : > { %v1200_v43 = vrot.slane %v962_v42, 7 }
 0x170   : > { %1587 = vst [vmem:[%s2022_s19 + $0x200] sm:$0xff] %v1512_v40  ;;  %v1475_v44 = vmax.f32 %v1400_v41, 0.0  ;;  %v851_v46 = vpop.f32.mrf.mxu1  ;;  %v716_v47 = vpop.f32.mrf.mxu2 }
 0x171   : > { %v1126_v48 = vrot.slane %v851_v46, 7  ;;  %v1201_v49 = vsel %vm1070_vm1, %v1198_v29, %v1200_v43 }
 0x172   : > { %1550 = vst [vmem:[%s2022_s19 + $0xd8] sm:$0xff] %v1475_v44  ;;  %v1360_v50 = vadd.f32 %v1201_v49, %v716_v47  ;;  %v605_v52 = vpop.f32.mrf.mxu0 }
 0x173   : > { %v1127_v53 = vsel %vm1070_vm1, %v1124_v33, %v1126_v48 }
 0x174   : > { %v1438_v55 = vadd.f32 %v2300_v62, %v1360_v50  ;;  %v1323_v56 = vadd.f32 %v1127_v53, %v605_v52 }
 0x176   : > { %v1513_v57 = vmax.f32 %v1438_v55, 0.0  ;;  %v1401_v58 = vadd.f32 %v2300_v62, %v1323_v56  ;;  %v965_v59 = vpop.f32.mrf.mxu3 }
 0x177   : > { %v1202_v60 = vrot.slane %v965_v59, 7 }
 0x178   : > { %1588 = vst [vmem:[%s2022_s19 + $0x208] sm:$0xff] %v1513_v57  ;;  %v1476_v61 = vmax.f32 %v1401_v58, 0.0  ;;  %v854_v0 = vpop.f32.mrf.mxu1  ;;  %v719_v1 = vpop.f32.mrf.mxu2 }
 0x179   : > { %v1128_v2 = vrot.slane %v854_v0, 7  ;;  %v1203_v3 = vsel %vm1070_vm1, %v1200_v43, %v1202_v60 }
 0x17a   : > { %1551 = vst [vmem:[%s2022_s19 + $0xe0] sm:$0xff] %v1476_v61  ;;  %v1361_v4 = vadd.f32 %v1203_v3, %v719_v1  ;;  %v608_v5 = vpop.f32.mrf.mxu0 }
 0x17b   : > { %v1129_v6 = vsel %vm1070_vm1, %v1126_v48, %v1128_v2 }
 0x17c   : > { %v1439_v7 = vadd.f32 %v2300_v62, %v1361_v4  ;;  %v1324_v45 = vadd.f32 %v1129_v6, %v608_v5 }
 0x17e   : > { %v1514_v8 = vmax.f32 %v1439_v7, 0.0  ;;  %v1402_v9 = vadd.f32 %v2300_v62, %v1324_v45  ;;  %v968_v10 = vpop.f32.mrf.mxu3 }
 0x17f   : > { %v1204_v11 = vrot.slane %v968_v10, 7 }
 0x180   : > { %1589 = vst [vmem:[%s2022_s19 + $0x210] sm:$0xff] %v1514_v8  ;;  %v1477_v12 = vmax.f32 %v1402_v9, 0.0  ;;  %v857_v13 = vpop.f32.mrf.mxu1  ;;  %v722_v14 = vpop.f32.mrf.mxu2 }
 0x181   : > { %v1130_v15 = vrot.slane %v857_v13, 7  ;;  %v1205_v16 = vsel %vm1070_vm1, %v1202_v60, %v1204_v11 }
 0x182   : > { %1552 = vst [vmem:[%s2022_s19 + $0xe8] sm:$0xff] %v1477_v12  ;;  %v1362_v17 = vadd.f32 %v1205_v16, %v722_v14  ;;  %v611_v18 = vpop.f32.mrf.mxu0 }
 0x183   : > { %v1131_v19 = vsel %vm1070_vm1, %v1128_v2, %v1130_v15 }
 0x184   : > { %v1440_v20 = vadd.f32 %v2300_v62, %v1362_v17  ;;  %v1325_v21 = vadd.f32 %v1131_v19, %v611_v18 }
 0x186   : > { %v1515_v22 = vmax.f32 %v1440_v20, 0.0  ;;  %v1403_v23 = vadd.f32 %v2300_v62, %v1325_v21  ;;  %v971_v24 = vpop.f32.mrf.mxu3 }
 0x187   : > { %v1206_v25 = vrot.slane %v971_v24, 7 }
 0x188   : > { %1590 = vst [vmem:[%s2022_s19 + $0x218] sm:$0xff] %v1515_v22  ;;  %v1478_v26 = vmax.f32 %v1403_v23, 0.0  ;;  %v860_v27 = vpop.f32.mrf.mxu1  ;;  %v725_v28 = vpop.f32.mrf.mxu2 }
 0x189   : > { %v1132_v29 = vrot.slane %v860_v27, 7  ;;  %v1207_v30 = vsel %vm1070_vm1, %v1204_v11, %v1206_v25 }
 0x18a   : > { %1553 = vst [vmem:[%s2022_s19 + $0xf0] sm:$0xff] %v1478_v26  ;;  %v1363_v31 = vadd.f32 %v1207_v30, %v725_v28  ;;  %v614_v32 = vpop.f32.mrf.mxu0 }
 0x18b   : > { %v1133_v33 = vsel %vm1070_vm1, %v1130_v15, %v1132_v29 }
 0x18c   : > { %v1441_v34 = vadd.f32 %v2300_v62, %v1363_v31  ;;  %v1326_v35 = vadd.f32 %v1133_v33, %v614_v32 }
 0x18e   : > { %v1516_v36 = vmax.f32 %v1441_v34, 0.0  ;;  %v1404_v37 = vadd.f32 %v2300_v62, %v1326_v35  ;;  %v974_v38 = vpop.f32.mrf.mxu3 }
 0x18f   : > { %v1208_v39 = vrot.slane %v974_v38, 7 }
 0x190   : > { %1591 = vst [vmem:[%s2022_s19 + $0x220] sm:$0xff] %v1516_v36  ;;  %v1479_v40 = vmax.f32 %v1404_v37, 0.0  ;;  %v863_v41 = vpop.f32.mrf.mxu1  ;;  %v728_v42 = vpop.f32.mrf.mxu2 }
 0x191   : > { %v1134_v43 = vrot.slane %v863_v41, 7  ;;  %v1209_v44 = vsel %vm1070_vm1, %v1206_v25, %v1208_v39 }
 0x192   : > { %1554 = vst [vmem:[%s2022_s19 + $0xf8] sm:$0xff] %v1479_v40  ;;  %v1364_v46 = vadd.f32 %v1209_v44, %v728_v42  ;;  %v617_v47 = vpop.f32.mrf.mxu0 }
 0x193   : > { %v1135_v48 = vsel %vm1070_vm1, %v1132_v29, %v1134_v43 }
 0x194   : > { %v1442_v49 = vadd.f32 %v2300_v62, %v1364_v46  ;;  %v1327_v50 = vadd.f32 %v1135_v48, %v617_v47 }
 0x196   : > { %v1517_v52 = vmax.f32 %v1442_v49, 0.0  ;;  %v1405_v53 = vadd.f32 %v2300_v62, %v1327_v50  ;;  %v977_v55 = vpop.f32.mrf.mxu3 }
 0x197   : > { %v1210_v56 = vrot.slane %v977_v55, 7 }
 0x198   : > { %1592 = vst [vmem:[%s2022_s19 + $0x228] sm:$0xff] %v1517_v52  ;;  %v1480_v57 = vmax.f32 %v1405_v53, 0.0  ;;  %v866_v58 = vpop.f32.mrf.mxu1  ;;  %v731_v59 = vpop.f32.mrf.mxu2 }
 0x199   : > { %v1136_v60 = vrot.slane %v866_v58, 7  ;;  %v1211_v61 = vsel %vm1070_vm1, %v1208_v39, %v1210_v56 }
 0x19a   : > { %1555 = vst [vmem:[%s2022_s19 + $0x100] sm:$0xff] %v1480_v57  ;;  %v1365_v0 = vadd.f32 %v1211_v61, %v731_v59  ;;  %v620_v1 = vpop.f32.mrf.mxu0 }
 0x19b   : > { %v1137_v2 = vsel %vm1070_vm1, %v1134_v43, %v1136_v60 }
 0x19c   : > { %v1443_v3 = vadd.f32 %v2300_v62, %v1365_v0  ;;  %v1328_v4 = vadd.f32 %v1137_v2, %v620_v1 }
 0x19e   : > { %v1518_v5 = vmax.f32 %v1443_v3, 0.0  ;;  %v1406_v6 = vadd.f32 %v2300_v62, %v1328_v4  ;;  %v980_v7 = vpop.f32.mrf.mxu3 }
 0x19f   : > { %v1212_v45 = vrot.slane %v980_v7, 7 }
 0x1a0   : > { %1593 = vst [vmem:[%s2022_s19 + $0x230] sm:$0xff] %v1518_v5  ;;  %v1481_v8 = vmax.f32 %v1406_v6, 0.0  ;;  %v869_v9 = vpop.f32.mrf.mxu1  ;;  %v734_v10 = vpop.f32.mrf.mxu2 }
 0x1a1   : > { %v1138_v11 = vrot.slane %v869_v9, 7  ;;  %v1213_v12 = vsel %vm1070_vm1, %v1210_v56, %v1212_v45 }
 0x1a2   : > { %1556 = vst [vmem:[%s2022_s19 + $0x108] sm:$0xff] %v1481_v8  ;;  %v1366_v13 = vadd.f32 %v1213_v12, %v734_v10  ;;  %v623_v14 = vpop.f32.mrf.mxu0 }
 0x1a3   : > { %v1139_v15 = vsel %vm1070_vm1, %v1136_v60, %v1138_v11 }
 0x1a4   : > { %v1444_v16 = vadd.f32 %v2300_v62, %v1366_v13  ;;  %v1329_v17 = vadd.f32 %v1139_v15, %v623_v14 }
 0x1a6   : > { %v1519_v18 = vmax.f32 %v1444_v16, 0.0  ;;  %v1407_v19 = vadd.f32 %v2300_v62, %v1329_v17  ;;  %v983_v20 = vpop.f32.mrf.mxu3 }
 0x1a7   : > { %v1214_v21 = vrot.slane %v983_v20, 7 }
 0x1a8   : > { %1594 = vst [vmem:[%s2022_s19 + $0x238] sm:$0xff] %v1519_v18  ;;  %v1482_v22 = vmax.f32 %v1407_v19, 0.0  ;;  %v872_v23 = vpop.f32.mrf.mxu1  ;;  %v737_v24 = vpop.f32.mrf.mxu2 }
 0x1a9   : > { %v1140_v25 = vrot.slane %v872_v23, 7  ;;  %v1215_v26 = vsel %vm1070_vm1, %v1212_v45, %v1214_v21 }
 0x1aa   : > { %1557 = vst [vmem:[%s2022_s19 + $0x110] sm:$0xff] %v1482_v22  ;;  %v1367_v27 = vadd.f32 %v1215_v26, %v737_v24  ;;  %v626_v28 = vpop.f32.mrf.mxu0 }
 0x1ab   : > { %v1141_v29 = vsel %vm1070_vm1, %v1138_v11, %v1140_v25 }
 0x1ac   : > { %v1445_v30 = vadd.f32 %v2300_v62, %v1367_v27  ;;  %v1330_v31 = vadd.f32 %v1141_v29, %v626_v28 }
 0x1ae   : > { %v1520_v32 = vmax.f32 %v1445_v30, 0.0  ;;  %v1408_v33 = vadd.f32 %v2300_v62, %v1330_v31  ;;  %v986_v34 = vpop.f32.mrf.mxu3 }
 0x1af   : > { %v1216_v35 = vrot.slane %v986_v34, 7 }
 0x1b0   : > { %1595 = vst [vmem:[%s2022_s19 + $0x240] sm:$0xff] %v1520_v32  ;;  %v1483_v36 = vmax.f32 %v1408_v33, 0.0  ;;  %v875_v37 = vpop.f32.mrf.mxu1  ;;  %v740_v38 = vpop.f32.mrf.mxu2 }
 0x1b1   : > { %v1142_v39 = vrot.slane %v875_v37, 7  ;;  %v1217_v40 = vsel %vm1070_vm1, %v1214_v21, %v1216_v35 }
 0x1b2   : > { %1558 = vst [vmem:[%s2022_s19 + $0x118] sm:$0xff] %v1483_v36  ;;  %v1368_v41 = vadd.f32 %v1217_v40, %v740_v38  ;;  %v629_v42 = vpop.f32.mrf.mxu0 }
 0x1b3   : > { %v1143_v43 = vsel %vm1070_vm1, %v1140_v25, %v1142_v39 }
 0x1b4   : > { %v1446_v44 = vadd.f32 %v2300_v62, %v1368_v41  ;;  %v1331_v46 = vadd.f32 %v1143_v43, %v629_v42 }
 0x1b6   : > { %v1521_v47 = vmax.f32 %v1446_v44, 0.0  ;;  %v1409_v48 = vadd.f32 %v2300_v62, %v1331_v46  ;;  %v989_v49 = vpop.f32.mrf.mxu3 }
 0x1b7   : > { %v1218_v50 = vrot.slane %v989_v49, 7  ;;  %v1598_v52 = vadd.f32 %v2300_v62, %v989_v49 }
 0x1b8   : > { %1596 = vst [vmem:[%s2022_s19 + $0x248] sm:$0xff] %v1521_v47  ;;  %v1484_v53 = vmax.f32 %v1409_v48, 0.0  ;;  %v878_v55 = vpop.f32.mrf.mxu1  ;;  %v743_v56 = vpop.f32.mrf.mxu2 }
 0x1b9   : > { %v1599_v57 = vmax.f32 %v1598_v52, 0.0  ;;  %v1144_v58 = vrot.slane %v878_v55, 7  ;;  %v1219_v59 = vsel %vm1070_vm1, %v1216_v35, %v1218_v50 }
 0x1ba   : > { %1559 = vst [vmem:[%s2022_s19 + $0x120] sm:$0xff] %v1484_v53  ;;  %v1369_v60 = vadd.f32 %v1219_v59, %v743_v56  ;;  %v632_v61 = vpop.f32.mrf.mxu0 }
 0x1bb   : > { %1600 = vst [vmem:[%s2022_s19 + $0x251] sm:$0x8] %v1599_v57  ;;  %v1147_v0 = vsel %vm1070_vm1, %v1144_v58, %v1146_v63  ;;  %v1145_v1 = vsel %vm1070_vm1, %v1142_v39, %v1144_v58 }
 0x1bc   : > { %v1333_v2 = vadd.f32 %v1147_v0, %v2030_v54  ;;  %v1447_v3 = vadd.f32 %v2300_v62, %v1369_v60  ;;  %v1332_v4 = vadd.f32 %v1145_v1, %v632_v61 }
 0x1be   : > { %v1411_v5 = vadd.f32 %v2300_v62, %v1333_v2  ;;  %v1522_v6 = vmax.f32 %v1447_v3, 0.0  ;;  %v1410_v7 = vadd.f32 %v2300_v62, %v1332_v4 }
 0x1c0   : > { %v1486_v45 = vmax.f32 %v1411_v5, 0.0  ;;  %1597 = vst [vmem:[%s2022_s19 + $0x250] sm:$0xf] %v1522_v6  ;;  %v1485_v8 = vmax.f32 %v1410_v7, 0.0 }
 0x1c2   : > { %1561 = vst [vmem:[%s2022_s19 + $0x130] sm:$0xff] %v1486_v45 }
 0x1c3   : > { %1560 = vst [vmem:[%s2022_s19 + $0x128] sm:$0xff] %v1485_v8 }
 0x1c4 PF: > { %s14_s15 = sadd.s32 1, %s1840_s15  }
 0x1c5   : > { %p11_p4 = scmp.ge.s32.totalorder %s14_s15, 4  }
 0x1c7   :  { %13 = sbr.rel (!%p11_p4) target bundleno = 1 (0x1), region = 66 }

</bundles_post_ra>
